<compile_context>
chip_gen: v7x
topology: tpu7x:2x2x1
jax: 0.10.0
libtpu: 0.0.40
codegen_flags: <defaults>
</compile_context>

<pallas_src>
import functools

import jax
import jax.numpy as jnp
from jax import lax
from jax.experimental import pallas as pl
from jax.experimental.pallas import tpu as pltpu

# ---------------- small synthetic GPT-J config (lane-dense) ----------------
VOCAB = 256
N_EMBD = 128                          # full 128-lane vreg width
N_LAYER = 2
N_HEAD = 4
HEAD_SIZE = N_EMBD // N_HEAD          # 32
ROTARY_DIM = 16                       # partial rotary (even), GPT-J style
N_INNER = 4 * N_EMBD                  # 512
EPS = 1e-5
ROPE_THETA = 10000.0
BATCH = 2                             # "parallel" grid axis (v7x 2nd TC)
SEQ = 16
SCALE = HEAD_SIZE ** -0.5
FUSED_W = 3 * N_EMBD + N_INNER        # 896  (qkv | fc_in)

assert HEAD_SIZE % 2 == 0 and ROTARY_DIM % 2 == 0  # roll-based pair swap needs this


def _gelu_new(x):
    # HF "gelu_new" (tanh approximation) used by GPT-J.
    return 0.5 * x * (1.0 + jnp.tanh(0.7978845608028654 * (x + 0.044715 * x * x * x)))


# ---------------------------------------------------------------------------
# Pallas kernel: whole GPT-J stack.  grid = (batch_tile, layer)
# ---------------------------------------------------------------------------
def gptj_stack_kernel(x_ref, cos_ref, sinA_ref, sinB_ref, mask_ref,
                      ln_g_ref, ln_b_ref, wbig_ref, bbig_ref,
                      wout_ref, wfo_ref, bfo_ref,
                      lnf_g_ref, lnf_b_ref,
                      out_ref, h_ref,
                      *, num_heads, head_size, eps):
    layer = pl.program_id(1)

    # Residual stream carried in VMEM scratch across the (inner) layer axis.
    @pl.when(layer == 0)
    def _():
        h_ref[...] = x_ref[...]

    x = h_ref[...]                                             # [T, H] f32
    T, H = x.shape
    two_h = 2 * H

    # --- ln_1 (f32 VPU) ---
    mu = jnp.mean(x, axis=-1, keepdims=True)
    var = jnp.mean((x - mu) ** 2, axis=-1, keepdims=True)
    ln = (x - mu) * lax.rsqrt(var + eps) * ln_g_ref[...] + ln_b_ref[...]
    ln_bf = ln.astype(jnp.bfloat16)                            # MXU operand

    # --- fused qkv_proj | fc_in projection (one matmul, bf16 x bf16 -> f32) ---
    fused = jnp.dot(ln_bf, wbig_ref[...],
                    preferred_element_type=jnp.float32) + bbig_ref[...]

    # --- GPT-J interleaved RoPE applied once to the joint q|k slab [T, 2H] ---
    # cos_ref: per-head repeat_interleave(2) cos (1.0 past rotary_dim), tiled.
    # sinA/sinB: signed sin masked to even/odd lanes -> pair swap via 2 rolls,
    # no parity select, no iota.  Wraparound lanes always hit a zero coeff.
    qk = fused[:, :two_h]
    rot = (qk * cos_ref[...]
           + pltpu.roll(qk, two_h - 1, axis=1) * sinA_ref[...]   # out[j] <- qk[j+1]
           + pltpu.roll(qk, 1, axis=1) * sinB_ref[...])          # out[j] <- qk[j-1]
    q = rot[:, :H]                    # attention scale already folded into W_q
    k = rot[:, H:two_h]
    v = fused[:, two_h:3 * H]
    mid = fused[:, 3 * H:]            # fc_in output (bias already added)

    # --- block-diagonal attention: heads stacked along sublanes ---
    def to_blocks(a2d):               # [T, H] f32 -> [NH*T, hd] (head-major rows)
        return jnp.concatenate(
            [a2d[:, h * head_size:(h + 1) * head_size] for h in range(num_heads)],
            axis=0)

    q_blk = to_blocks(q).astype(jnp.bfloat16)
    k_blk = to_blocks(k).astype(jnp.bfloat16)
    v_blk = to_blocks(v).astype(jnp.bfloat16)

    # ONE QK^T over all heads; cross-head blocks + future tokens masked by the
    # precomputed additive bias (constant input, hoisted out of the grid loop).
    s = lax.dot_general(q_blk, k_blk, (((1,), (1,)), ((), ())),
                        preferred_element_type=jnp.float32)       # [NH*T, NH*T]
    s = s + mask_ref[...]
    s = s - jnp.max(s, axis=-1, keepdims=True)
    p = jnp.exp(s)
    p = p * pl.reciprocal(jnp.sum(p, axis=-1, keepdims=True), approx=True)
    ctx_blk = jnp.dot(p.astype(jnp.bfloat16), v_blk,
                      preferred_element_type=jnp.float32)          # [NH*T, hd]
    ctx = jnp.concatenate(
        [ctx_blk[h * T:(h + 1) * T, :] for h in range(num_heads)], axis=1)  # [T, H]
    attn_out = jnp.dot(ctx.astype(jnp.bfloat16), wout_ref[...],
                       preferred_element_type=jnp.float32)

    # --- MLP tail (fc_in already fused above) ---
    hmid = _gelu_new(mid)                                          # f32 VPU/EUP
    mlp_out = jnp.dot(hmid.astype(jnp.bfloat16), wfo_ref[...],
                      preferred_element_type=jnp.float32) + bfo_ref[...]

    # --- GPT-J parallel residual ---
    h_new = attn_out + mlp_out + x
    h_ref[...] = h_new

    # --- final LayerNorm fused into the last layer's grid step ---
    @pl.when(layer == pl.num_programs(1) - 1)
    def _():
        mu_f = jnp.mean(h_new, axis=-1, keepdims=True)
        var_f = jnp.mean((h_new - mu_f) ** 2, axis=-1, keepdims=True)
        out_ref[...] = ((h_new - mu_f) * lax.rsqrt(var_f + eps)
                        * lnf_g_ref[...] + lnf_b_ref[...])


# ---------------------------------------------------------------------------
# Host-side constant tables (hoisted out of the kernel grid loop)
# ---------------------------------------------------------------------------
def rope_tables(positions):
    """cos / sinA / sinB tables of shape [B, T, 2H] for the joint q|k slab."""
    B, T = positions.shape
    inv_freq = 1.0 / (ROPE_THETA ** (jnp.arange(0, ROTARY_DIM, 2, dtype=jnp.float32)
                                     / ROTARY_DIM))
    freqs = positions.astype(jnp.float32)[..., None] * inv_freq          # [B,T,rot/2]
    cos = jnp.repeat(jnp.cos(freqs), 2, axis=-1)                         # [B,T,rot]
    sin = jnp.repeat(jnp.sin(freqs), 2, axis=-1)
    pad = HEAD_SIZE - ROTARY_DIM
    cos_h = jnp.concatenate([cos, jnp.ones((B, T, pad), jnp.float32)], axis=-1)
    sin_h = jnp.concatenate([sin, jnp.zeros((B, T, pad), jnp.float32)], axis=-1)
    # interleave sign baked in: even lanes -> -sin, odd lanes -> +sin
    sign = jnp.tile(jnp.array([-1.0, 1.0], jnp.float32), (HEAD_SIZE // 2,))
    sin_signed = sin_h * sign
    lane = jnp.arange(HEAD_SIZE)
    even = (lane % 2 == 0).astype(jnp.float32)
    sinA_h = sin_signed * even          # multiplies roll-forward neighbor (even lanes)
    sinB_h = sin_signed * (1.0 - even)  # multiplies roll-backward neighbor (odd lanes)
    reps = 2 * N_HEAD                   # tile across heads and across the q|k slab
    return (jnp.tile(cos_h, (1, 1, reps)),
            jnp.tile(sinA_h, (1, 1, reps)),
            jnp.tile(sinB_h, (1, 1, reps)))


def attn_mask_bias(T):
    """Additive bias [NH*T, NH*T]: 0 for same-head causal entries, -1e30 else."""
    idx = jnp.arange(N_HEAD * T)
    head = idx // T
    tok = idx % T
    allowed = (head[:, None] == head[None, :]) & (tok[None, :] <= tok[:, None])
    return jnp.where(allowed, 0.0, -1e30).astype(jnp.float32)


# ---------------------------------------------------------------------------
# Wrapper (pallas_call plumbing)
# ---------------------------------------------------------------------------
def gptj_forward(input_ids, positions, params):
    B, T = input_ids.shape
    H = N_EMBD
    cos2, sinA2, sinB2 = rope_tables(positions)                  # [B, T, 2H] each
    mask = attn_mask_bias(T)                                     # [NH*T, NH*T]

    # TODO(synk): VocabParallelEmbedding gather kept as glue outside the kernel.
    x = jnp.take(params["wte"], input_ids.reshape(-1), axis=0).reshape(B, T, H)

    args = (x, cos2, sinA2, sinB2, mask,
            params["ln_g"], params["ln_b"], params["w_big"], params["b_big"],
            params["wout"], params["wfo"], params["bfo"],
            params["lnf_g"], params["lnf_b"])

    def batch_spec(shape):            # leading dim indexed by batch tile
        trail = tuple(shape[1:])
        return pl.BlockSpec((None,) + trail,
                            lambda b, l, _n=len(trail): (b,) + (0,) * _n)

    def layer_spec(shape):            # leading dim indexed by layer
        trail = tuple(shape[1:])
        return pl.BlockSpec((None,) + trail,
                            lambda b, l, _n=len(trail): (l,) + (0,) * _n)

    def const_spec(shape):
        nd = len(shape)
        return pl.BlockSpec(tuple(shape), lambda b, l, _nd=nd: (0,) * _nd)

    in_specs = [
        batch_spec(x.shape),
        batch_spec(cos2.shape),
        batch_spec(sinA2.shape),
        batch_spec(sinB2.shape),
        const_spec(mask.shape),
        layer_spec(params["ln_g"].shape),
        layer_spec(params["ln_b"].shape),
        layer_spec(params["w_big"].shape),
        layer_spec(params["b_big"].shape),
        layer_spec(params["wout"].shape),
        layer_spec(params["wfo"].shape),
        layer_spec(params["bfo"].shape),
        const_spec(params["lnf_g"].shape),
        const_spec(params["lnf_b"].shape),
    ]

    kernel = functools.partial(gptj_stack_kernel, num_heads=N_HEAD,
                               head_size=HEAD_SIZE, eps=EPS)

    return pl.pallas_call(
        kernel,
        out_shape=jax.ShapeDtypeStruct((B, T, H), jnp.float32),
        grid=(B, N_LAYER),
        in_specs=in_specs,
        out_specs=pl.BlockSpec((None, T, H), lambda b, l: (b, 0, 0)),
        scratch_shapes=[pltpu.VMEM((T, H), jnp.float32)],        # residual stream
        compiler_params=pltpu.CompilerParams(
            dimension_semantics=("parallel", "arbitrary"),       # batch ∥, layers seq
            vmem_limit_bytes=32 * 1024 * 1024),
    )(*args)


# ---------------------------------------------------------------------------
# Parameter construction (stacked per layer; kernel matmul weights fused, bf16)
# ---------------------------------------------------------------------------
def init_params(key):
    def nrm(k, shape, s=0.02):
        return (s * jax.random.normal(k, shape)).astype(jnp.float32)

    keys = iter(jax.random.split(key, 3 + 8 * N_LAYER))
    wte = nrm(next(keys), (VOCAB, N_EMBD))
    lnf_g = 1.0 + nrm(next(keys), (1, N_EMBD))
    lnf_b = nrm(next(keys), (1, N_EMBD))

    ln_g, ln_b, wqkv, wout, wfi, bfi, wfo, bfo = ([] for _ in range(8))
    for _ in range(N_LAYER):
        ln_g.append(1.0 + nrm(next(keys), (1, N_EMBD)))
        ln_b.append(nrm(next(keys), (1, N_EMBD)))
        wqkv.append(nrm(next(keys), (N_EMBD, 3 * N_EMBD)))
        wout.append(nrm(next(keys), (N_EMBD, N_EMBD)))
        wfi.append(nrm(next(keys), (N_EMBD, N_INNER)))
        bfi.append(nrm(next(keys), (1, N_INNER)))
        wfo.append(nrm(next(keys), (N_INNER, N_EMBD)))
        bfo.append(nrm(next(keys), (1, N_EMBD)))

    ln_g, ln_b = jnp.stack(ln_g), jnp.stack(ln_b)
    wqkv, wout = jnp.stack(wqkv), jnp.stack(wout)
    wfi, bfi = jnp.stack(wfi), jnp.stack(bfi)
    wfo, bfo = jnp.stack(wfo), jnp.stack(bfo)

    # Kernel weights: fold attention scale into q columns, fuse qkv | fc_in.
    col_scale = jnp.concatenate([jnp.full((N_EMBD,), SCALE, jnp.float32),
                                 jnp.ones((2 * N_EMBD,), jnp.float32)])
    w_big = jnp.concatenate([wqkv * col_scale[None, None, :], wfi],
                            axis=-1).astype(jnp.bfloat16)           # [L, H, 896]
    b_big = jnp.concatenate(
        [jnp.zeros((N_LAYER, 1, 3 * N_EMBD), jnp.float32), bfi], axis=-1)

    return {
        # kernel-side tensors
        "wte": wte, "lnf_g": lnf_g, "lnf_b": lnf_b,
        "ln_g": ln_g, "ln_b": ln_b,
        "w_big": w_big, "b_big": b_big,
        "wout": wout.astype(jnp.bfloat16),
        "wfo": wfo.astype(jnp.bfloat16), "bfo": bfo,
        # reference-side (unfused) tensors, bf16-rounded matmul weights
        "wqkv": wqkv.astype(jnp.bfloat16),
        "wfi": wfi.astype(jnp.bfloat16), "bfi": bfi,
    }


# ---------------------------------------------------------------------------
# Pure-JAX f32 reference (correctness check)
# ---------------------------------------------------------------------------
def _ref_rope(x, positions):
    T = x.shape[0]
    inv_freq = 1.0 / (ROPE_THETA ** (jnp.arange(0, ROTARY_DIM, 2, dtype=jnp.float32)
                                     / ROTARY_DIM))
    freqs = positions.astype(jnp.float32)[:, None] * inv_freq[None, :]
    cos = jnp.cos(freqs)[:, None, :]
    sin = jnp.sin(freqs)[:, None, :]
    xh = x.reshape(T, N_HEAD, HEAD_SIZE)
    xr, xp = xh[..., :ROTARY_DIM], xh[..., ROTARY_DIM:]
    x1, x2 = xr[..., 0::2], xr[..., 1::2]
    o1 = x1 * cos - x2 * sin
    o2 = x2 * cos + x1 * sin
    o = jnp.stack([o1, o2], axis=-1).reshape(T, N_HEAD, ROTARY_DIM)
    return jnp.concatenate([o, xp], axis=-1).reshape(T, N_EMBD)


def _ref_block(x, positions, p, li):
    T = x.shape[0]
    f32 = jnp.float32
    mu = x.mean(-1, keepdims=True)
    var = ((x - mu) ** 2).mean(-1, keepdims=True)
    ln = (x - mu) / jnp.sqrt(var + EPS) * p["ln_g"][li] + p["ln_b"][li]
    qkv = ln @ p["wqkv"][li].astype(f32)
    q, k, v = jnp.split(qkv, 3, axis=-1)
    q = _ref_rope(q, positions)
    k = _ref_rope(k, positions)
    qh = q.reshape(T, N_HEAD, HEAD_SIZE)
    kh = k.reshape(T, N_HEAD, HEAD_SIZE)
    vh = v.reshape(T, N_HEAD, HEAD_SIZE)
    s = jnp.einsum("qhd,khd->hqk", qh, kh) * SCALE
    causal = jnp.tril(jnp.ones((T, T), bool))
    s = jnp.where(causal[None], s, -1e30)
    pattn = jax.nn.softmax(s, axis=-1)
    o = jnp.einsum("hqk,khd->qhd", pattn, vh).reshape(T, N_EMBD)
    attn_out = o @ p["wout"][li].astype(f32)
    hmid = _gelu_new(ln @ p["wfi"][li].astype(f32) + p["bfi"][li])
    mlp_out = hmid @ p["wfo"][li].astype(f32) + p["bfo"][li]
    return attn_out + mlp_out + x


def ref_forward(input_ids, positions, params):
    outs = []
    for b in range(input_ids.shape[0]):
        h = jnp.take(params["wte"], input_ids[b], axis=0)
        for li in range(N_LAYER):
            h = _ref_block(h, positions[b], params, li)
        mu = h.mean(-1, keepdims=True)
        var = ((h - mu) ** 2).mean(-1, keepdims=True)
        outs.append((h - mu) / jnp.sqrt(var + EPS)
                    * params["lnf_g"] + params["lnf_b"])
    return jnp.stack(outs)


# ---------------------------------------------------------------------------
if __name__ == "__main__":
    key = jax.random.PRNGKey(0)
    k_param, k_ids = jax.random.split(key)
    params = init_params(k_param)

    input_ids = jax.random.randint(k_ids, (BATCH, SEQ), 0, VOCAB, dtype=jnp.int32)
    positions = jnp.tile(jnp.arange(SEQ, dtype=jnp.int32)[None, :], (BATCH, 1))

    out = jax.block_until_ready(gptj_forward(input_ids, positions, params))
    ref = jax.block_until_ready(ref_forward(input_ids, positions, params))

    assert out.shape == (BATCH, SEQ, N_EMBD), out.shape
    assert bool(jnp.all(jnp.isfinite(out)))
    assert bool(jnp.allclose(out, ref, rtol=5e-2, atol=5e-2)), (
        float(jnp.max(jnp.abs(out - ref))))

    print("KERNEL_OK")
</pallas_src>

<mosaic_0001>
module attributes {stable_mosaic.version = 11 : i64} {
  func.func @gptj_stack_kernel(%arg0: i32, %arg1: i32, %arg2: memref<1x16x128xf32, #tpu.memory_space<vmem>>, %arg3: memref<1x16x256xf32, #tpu.memory_space<vmem>>, %arg4: memref<1x16x256xf32, #tpu.memory_space<vmem>>, %arg5: memref<1x16x256xf32, #tpu.memory_space<vmem>>, %arg6: memref<64x64xf32, #tpu.memory_space<vmem>>, %arg7: memref<1x1x128xf32, #tpu.memory_space<vmem>>, %arg8: memref<1x1x128xf32, #tpu.memory_space<vmem>>, %arg9: memref<1x128x896xbf16, #tpu.memory_space<vmem>>, %arg10: memref<1x1x896xf32, #tpu.memory_space<vmem>>, %arg11: memref<1x128x128xbf16, #tpu.memory_space<vmem>>, %arg12: memref<1x512x128xbf16, #tpu.memory_space<vmem>>, %arg13: memref<1x1x128xf32, #tpu.memory_space<vmem>>, %arg14: memref<1x128xf32, #tpu.memory_space<vmem>>, %arg15: memref<1x128xf32, #tpu.memory_space<vmem>>, %arg16: memref<1x16x128xf32, #tpu.memory_space<vmem>>, %arg17: memref<16x128xf32, #tpu.memory_space<vmem>>) attributes {dimension_semantics = [#tpu.dimension_semantics<parallel>, #tpu.dimension_semantics<arbitrary>], iteration_bounds = array<i64: 2, 2>, scalar_prefetch = 0 : i64, scratch_operands = 1 : i64, tpu.core_type = #tpu.core_type<tc>, window_params = [{transform_indices = @transform_0, window_bounds = array<i64: 1, 16, 128>}, {transform_indices = @transform_1, window_bounds = array<i64: 1, 16, 256>}, {transform_indices = @transform_2, window_bounds = array<i64: 1, 16, 256>}, {transform_indices = @transform_3, window_bounds = array<i64: 1, 16, 256>}, {pipeline_mode = #tpu.pipeline_mode<synchronous>, transform_indices = @transform_4, window_bounds = array<i64: 64, 64>}, {transform_indices = @transform_5, window_bounds = array<i64: 1, 1, 128>}, {transform_indices = @transform_6, window_bounds = array<i64: 1, 1, 128>}, {transform_indices = @transform_7, window_bounds = array<i64: 1, 128, 896>}, {transform_indices = @transform_8, window_bounds = array<i64: 1, 1, 896>}, {transform_indices = @transform_9, window_bounds = array<i64: 1, 128, 128>}, {transform_indices = @transform_10, window_bounds = array<i64: 1, 512, 128>}, {transform_indices = @transform_11, window_bounds = array<i64: 1, 1, 128>}, {pipeline_mode = #tpu.pipeline_mode<synchronous>, transform_indices = @transform_12, window_bounds = array<i64: 1, 128>}, {pipeline_mode = #tpu.pipeline_mode<synchronous>, transform_indices = @transform_13, window_bounds = array<i64: 1, 128>}, {transform_indices = @transform_14, window_bounds = array<i64: 1, 16, 128>}]} {
    %c0_i32 = arith.constant 0 : i32
    %0 = arith.cmpi eq, %arg1, %c0_i32 : i32
    %1 = arith.extui %0 : i1 to i32
    %c0_i32_0 = arith.constant 0 : i32
    %2 = arith.cmpi ne, %1, %c0_i32_0 : i32
    scf.if %2 {
      %c0_53 = arith.constant 0 : index
      %c0_54 = arith.constant 0 : index
      %c0_55 = arith.constant 0 : index
      %125 = vector.load %arg2[%c0_53, %c0_54, %c0_55] : memref<1x16x128xf32, #tpu.memory_space<vmem>>, vector<1x16x128xf32>
      %126 = vector.shape_cast %125 : vector<1x16x128xf32> to vector<16x128xf32>
      %c0_56 = arith.constant 0 : index
      %c0_57 = arith.constant 0 : index
      %127 = vector.load %arg17[%c0_56, %c0_57] : memref<16x128xf32, #tpu.memory_space<vmem>>, vector<16x128xf32>
      tpu.vector_store %arg17[%c0_56, %c0_57], %126 {strides = array<i32>} : memref<16x128xf32, #tpu.memory_space<vmem>>, vector<16x128xf32>,
    } else {
    }
    %c0 = arith.constant 0 : index
    %c0_1 = arith.constant 0 : index
    %3 = vector.load %arg17[%c0, %c0_1] : memref<16x128xf32, #tpu.memory_space<vmem>>, vector<16x128xf32>
    %cst = arith.constant dense<0.000000e+00> : vector<16xf32>
    %4 = vector.multi_reduction <add>, %3, %cst [1] : vector<16x128xf32> to vector<16xf32>
    %5 = vector.shape_cast %4 : vector<16xf32> to vector<16x1xf32>
    %cst_2 = arith.constant 1.280000e+02 : f32
    %6 = vector.broadcast %cst_2 : f32 to vector<16x1xf32>
    %7 = arith.divf %5, %6 : vector<16x1xf32>
    %8 = vector.broadcast %7 : vector<16x1xf32> to vector<16x128xf32>
    %9 = arith.subf %3, %8 : vector<16x128xf32>
    %10 = arith.mulf %9, %9 : vector<16x128xf32>
    %cst_3 = arith.constant dense<0.000000e+00> : vector<16xf32>
    %11 = vector.multi_reduction <add>, %10, %cst_3 [1] : vector<16x128xf32> to vector<16xf32>
    %12 = vector.shape_cast %11 : vector<16xf32> to vector<16x1xf32>
    %cst_4 = arith.constant 1.280000e+02 : f32
    %13 = vector.broadcast %cst_4 : f32 to vector<16x1xf32>
    %14 = arith.divf %12, %13 : vector<16x1xf32>
    %15 = vector.broadcast %7 : vector<16x1xf32> to vector<16x128xf32>
    %16 = arith.subf %3, %15 : vector<16x128xf32>
    %cst_5 = arith.constant 9.99999974E-6 : f32
    %17 = vector.broadcast %cst_5 : f32 to vector<16x1xf32>
    %18 = arith.addf %14, %17 : vector<16x1xf32>
    %19 = math.rsqrt %18 : vector<16x1xf32>
    %20 = vector.broadcast %19 : vector<16x1xf32> to vector<16x128xf32>
    %21 = arith.mulf %16, %20 : vector<16x128xf32>
    %c0_6 = arith.constant 0 : index
    %c0_7 = arith.constant 0 : index
    %c0_8 = arith.constant 0 : index
    %22 = vector.load %arg7[%c0_6, %c0_7, %c0_8] : memref<1x1x128xf32, #tpu.memory_space<vmem>>, vector<1x1x128xf32>
    %23 = vector.shape_cast %22 : vector<1x1x128xf32> to vector<1x128xf32>
    %24 = vector.broadcast %23 : vector<1x128xf32> to vector<16x128xf32>
    %25 = arith.mulf %21, %24 : vector<16x128xf32>
    %c0_9 = arith.constant 0 : index
    %c0_10 = arith.constant 0 : index
    %c0_11 = arith.constant 0 : index
    %26 = vector.load %arg8[%c0_9, %c0_10, %c0_11] : memref<1x1x128xf32, #tpu.memory_space<vmem>>, vector<1x1x128xf32>
    %27 = vector.shape_cast %26 : vector<1x1x128xf32> to vector<1x128xf32>
    %28 = vector.broadcast %27 : vector<1x128xf32> to vector<16x128xf32>
    %29 = arith.addf %25, %28 : vector<16x128xf32>
    %30 = arith.truncf %29 : vector<16x128xf32> to vector<16x128xbf16>
    %c0_12 = arith.constant 0 : index
    %c0_13 = arith.constant 0 : index
    %c0_14 = arith.constant 0 : index
    %31 = vector.load %arg9[%c0_12, %c0_13, %c0_14] : memref<1x128x896xbf16, #tpu.memory_space<vmem>>, vector<1x128x896xbf16>
    %32 = vector.shape_cast %31 : vector<1x128x896xbf16> to vector<128x896xbf16>
    %cst_15 = arith.constant dense<0.000000e+00> : vector<16x896xf32>
    %33 = tpu.matmul %30, %32, %cst_15 {dimension_numbers = #tpu.dot_dimension_numbers<[1], [0], [0], [1], [0, 0, 1, 1], [], []>} : vector<16x128xbf16>, vector<128x896xbf16>, vector<16x896xf32> -> vector<16x896xf32>
    %c0_16 = arith.constant 0 : index
    %c0_17 = arith.constant 0 : index
    %c0_18 = arith.constant 0 : index
    %34 = vector.load %arg10[%c0_16, %c0_17, %c0_18] : memref<1x1x896xf32, #tpu.memory_space<vmem>>, vector<1x1x896xf32>
    %35 = vector.shape_cast %34 : vector<1x1x896xf32> to vector<1x896xf32>
    %36 = vector.broadcast %35 : vector<1x896xf32> to vector<16x896xf32>
    %37 = arith.addf %33, %36 : vector<16x896xf32>
    %38 = vector.extract_strided_slice %37 {offsets = [0, 0], sizes = [16, 256], strides = [1, 1]} : vector<16x896xf32> to vector<16x256xf32>
    %c0_19 = arith.constant 0 : index
    %c0_20 = arith.constant 0 : index
    %c0_21 = arith.constant 0 : index
    %39 = vector.load %arg3[%c0_19, %c0_20, %c0_21] : memref<1x16x256xf32, #tpu.memory_space<vmem>>, vector<1x16x256xf32>
    %40 = vector.shape_cast %39 : vector<1x16x256xf32> to vector<16x256xf32>
    %41 = arith.mulf %38, %40 : vector<16x256xf32>
    %c255_i32 = arith.constant 255 : i32
    %42 = tpu.dynamic_rotate %38 by %c255_i32 dim 1 : vector<16x256xf32>, i32 -> vector<16x256xf32>
    %c0_22 = arith.constant 0 : index
    %c0_23 = arith.constant 0 : index
    %c0_24 = arith.constant 0 : index
    %43 = vector.load %arg4[%c0_22, %c0_23, %c0_24] : memref<1x16x256xf32, #tpu.memory_space<vmem>>, vector<1x16x256xf32>
    %44 = vector.shape_cast %43 : vector<1x16x256xf32> to vector<16x256xf32>
    %45 = arith.mulf %42, %44 : vector<16x256xf32>
    %46 = arith.addf %41, %45 : vector<16x256xf32>
    %c1_i32 = arith.constant 1 : i32
    %47 = tpu.dynamic_rotate %38 by %c1_i32 dim 1 : vector<16x256xf32>, i32 -> vector<16x256xf32>
    %c0_25 = arith.constant 0 : index
    %c0_26 = arith.constant 0 : index
    %c0_27 = arith.constant 0 : index
    %48 = vector.load %arg5[%c0_25, %c0_26, %c0_27] : memref<1x16x256xf32, #tpu.memory_space<vmem>>, vector<1x16x256xf32>
    %49 = vector.shape_cast %48 : vector<1x16x256xf32> to vector<16x256xf32>
    %50 = arith.mulf %47, %49 : vector<16x256xf32>
    %51 = arith.addf %46, %50 : vector<16x256xf32>
    %52 = vector.extract_strided_slice %51 {offsets = [0, 0], sizes = [16, 128], strides = [1, 1]} : vector<16x256xf32> to vector<16x128xf32>
    %53 = vector.extract_strided_slice %51 {offsets = [0, 128], sizes = [16, 128], strides = [1, 1]} : vector<16x256xf32> to vector<16x128xf32>
    %54 = vector.extract_strided_slice %37 {offsets = [0, 256], sizes = [16, 128], strides = [1, 1]} : vector<16x896xf32> to vector<16x128xf32>
    %55 = vector.extract_strided_slice %37 {offsets = [0, 384], sizes = [16, 512], strides = [1, 1]} : vector<16x896xf32> to vector<16x512xf32>
    %56 = vector.extract_strided_slice %52 {offsets = [0, 0], sizes = [16, 32], strides = [1, 1]} : vector<16x128xf32> to vector<16x32xf32>
    %57 = vector.extract_strided_slice %52 {offsets = [0, 32], sizes = [16, 32], strides = [1, 1]} : vector<16x128xf32> to vector<16x32xf32>
    %58 = vector.extract_strided_slice %52 {offsets = [0, 64], sizes = [16, 32], strides = [1, 1]} : vector<16x128xf32> to vector<16x32xf32>
    %59 = vector.extract_strided_slice %52 {offsets = [0, 96], sizes = [16, 32], strides = [1, 1]} : vector<16x128xf32> to vector<16x32xf32>
    %60 = tpu.concatenate %56, %57, %58, %59 in 0 : vector<16x32xf32>, vector<16x32xf32>, vector<16x32xf32>, vector<16x32xf32> -> vector<64x32xf32>
    %61 = arith.truncf %60 : vector<64x32xf32> to vector<64x32xbf16>
    %62 = vector.extract_strided_slice %53 {offsets = [0, 0], sizes = [16, 32], strides = [1, 1]} : vector<16x128xf32> to vector<16x32xf32>
    %63 = vector.extract_strided_slice %53 {offsets = [0, 32], sizes = [16, 32], strides = [1, 1]} : vector<16x128xf32> to vector<16x32xf32>
    %64 = vector.extract_strided_slice %53 {offsets = [0, 64], sizes = [16, 32], strides = [1, 1]} : vector<16x128xf32> to vector<16x32xf32>
    %65 = vector.extract_strided_slice %53 {offsets = [0, 96], sizes = [16, 32], strides = [1, 1]} : vector<16x128xf32> to vector<16x32xf32>
    %66 = tpu.concatenate %62, %63, %64, %65 in 0 : vector<16x32xf32>, vector<16x32xf32>, vector<16x32xf32>, vector<16x32xf32> -> vector<64x32xf32>
    %67 = arith.truncf %66 : vector<64x32xf32> to vector<64x32xbf16>
    %68 = vector.extract_strided_slice %54 {offsets = [0, 0], sizes = [16, 32], strides = [1, 1]} : vector<16x128xf32> to vector<16x32xf32>
    %69 = vector.extract_strided_slice %54 {offsets = [0, 32], sizes = [16, 32], strides = [1, 1]} : vector<16x128xf32> to vector<16x32xf32>
    %70 = vector.extract_strided_slice %54 {offsets = [0, 64], sizes = [16, 32], strides = [1, 1]} : vector<16x128xf32> to vector<16x32xf32>
    %71 = vector.extract_strided_slice %54 {offsets = [0, 96], sizes = [16, 32], strides = [1, 1]} : vector<16x128xf32> to vector<16x32xf32>
    %72 = tpu.concatenate %68, %69, %70, %71 in 0 : vector<16x32xf32>, vector<16x32xf32>, vector<16x32xf32>, vector<16x32xf32> -> vector<64x32xf32>
    %73 = arith.truncf %72 : vector<64x32xf32> to vector<64x32xbf16>
    %cst_28 = arith.constant dense<0.000000e+00> : vector<64x64xf32>
    %74 = tpu.matmul %61, %67, %cst_28 {dimension_numbers = #tpu.dot_dimension_numbers<[1], [1], [0], [0], [0, 0, 1, 0], [], []>} : vector<64x32xbf16>, vector<64x32xbf16>, vector<64x64xf32> -> vector<64x64xf32>
    %c0_29 = arith.constant 0 : index
    %c0_30 = arith.constant 0 : index
    %75 = vector.load %arg6[%c0_29, %c0_30] : memref<64x64xf32, #tpu.memory_space<vmem>>, vector<64x64xf32>
    %76 = arith.addf %74, %75 : vector<64x64xf32>
    %cst_31 = arith.constant dense<0xFF800000> : vector<64xf32>
    %77 = vector.multi_reduction <maximumf>, %76, %cst_31 [1] : vector<64x64xf32> to vector<64xf32>
    %78 = vector.shape_cast %77 : vector<64xf32> to vector<64x1xf32>
    %79 = vector.broadcast %78 : vector<64x1xf32> to vector<64x64xf32>
    %80 = arith.subf %76, %79 : vector<64x64xf32>
    %81 = math.exp %80 : vector<64x64xf32>
    %cst_32 = arith.constant dense<0.000000e+00> : vector<64xf32>
    %82 = vector.multi_reduction <add>, %81, %cst_32 [1] : vector<64x64xf32> to vector<64xf32>
    %83 = vector.shape_cast %82 : vector<64xf32> to vector<64x1xf32>
    %84 = tpu.reciprocal %83 {approx = true} : vector<64x1xf32> -> vector<64x1xf32>
    %85 = vector.broadcast %84 : vector<64x1xf32> to vector<64x64xf32>
    %86 = arith.mulf %81, %85 : vector<64x64xf32>
    %87 = arith.truncf %86 : vector<64x64xf32> to vector<64x64xbf16>
    %cst_33 = arith.constant dense<0.000000e+00> : vector<64x32xf32>
    %88 = tpu.matmul %87, %73, %cst_33 {dimension_numbers = #tpu.dot_dimension_numbers<[1], [0], [0], [1], [0, 0, 1, 1], [], []>} : vector<64x64xbf16>, vector<64x32xbf16>, vector<64x32xf32> -> vector<64x32xf32>
    %89 = vector.extract_strided_slice %88 {offsets = [0, 0], sizes = [16, 32], strides = [1, 1]} : vector<64x32xf32> to vector<16x32xf32>
    %90 = vector.extract_strided_slice %88 {offsets = [16, 0], sizes = [16, 32], strides = [1, 1]} : vector<64x32xf32> to vector<16x32xf32>
    %91 = vector.extract_strided_slice %88 {offsets = [32, 0], sizes = [16, 32], strides = [1, 1]} : vector<64x32xf32> to vector<16x32xf32>
    %92 = vector.extract_strided_slice %88 {offsets = [48, 0], sizes = [16, 32], strides = [1, 1]} : vector<64x32xf32> to vector<16x32xf32>
    %93 = tpu.concatenate %89, %90, %91, %92 in 1 : vector<16x32xf32>, vector<16x32xf32>, vector<16x32xf32>, vector<16x32xf32> -> vector<16x128xf32>
    %94 = arith.truncf %93 : vector<16x128xf32> to vector<16x128xbf16>
    %c0_34 = arith.constant 0 : index
    %c0_35 = arith.constant 0 : index
    %c0_36 = arith.constant 0 : index
    %95 = vector.load %arg11[%c0_34, %c0_35, %c0_36] : memref<1x128x128xbf16, #tpu.memory_space<vmem>>, vector<1x128x128xbf16>
    %96 = vector.shape_cast %95 : vector<1x128x128xbf16> to vector<128x128xbf16>
    %cst_37 = arith.constant dense<0.000000e+00> : vector<16x128xf32>
    %97 = tpu.matmul %94, %96, %cst_37 {dimension_numbers = #tpu.dot_dimension_numbers<[1], [0], [0], [1], [0, 0, 1, 1], [], []>} : vector<16x128xbf16>, vector<128x128xbf16>, vector<16x128xf32> -> vector<16x128xf32>
    %cst_38 = arith.constant 5.000000e-01 : f32
    %98 = vector.broadcast %cst_38 : f32 to vector<16x512xf32>
    %99 = arith.mulf %98, %55 : vector<16x512xf32>
    %cst_39 = arith.constant 4.471500e-02 : f32
    %100 = vector.broadcast %cst_39 : f32 to vector<16x512xf32>
    %101 = arith.mulf %100, %55 : vector<16x512xf32>
    %102 = arith.mulf %101, %55 : vector<16x512xf32>
    %103 = arith.mulf %102, %55 : vector<16x512xf32>
    %104 = arith.addf %55, %103 : vector<16x512xf32>
    %cst_40 = arith.constant 0.797884583 : f32
    %105 = vector.broadcast %cst_40 : f32 to vector<16x512xf32>
    %106 = arith.mulf %105, %104 : vector<16x512xf32>
    %107 = math.tanh %106 : vector<16x512xf32>
    %cst_41 = arith.constant 1.000000e+00 : f32
    %108 = vector.broadcast %cst_41 : f32 to vector<16x512xf32>
    %109 = arith.addf %108, %107 : vector<16x512xf32>
    %110 = arith.mulf %99, %109 : vector<16x512xf32>
    %111 = arith.truncf %110 : vector<16x512xf32> to vector<16x512xbf16>
    %c0_42 = arith.constant 0 : index
    %c0_43 = arith.constant 0 : index
    %c0_44 = arith.constant 0 : index
    %112 = vector.load %arg12[%c0_42, %c0_43, %c0_44] : memref<1x512x128xbf16, #tpu.memory_space<vmem>>, vector<1x512x128xbf16>
    %113 = vector.shape_cast %112 : vector<1x512x128xbf16> to vector<512x128xbf16>
    %cst_45 = arith.constant dense<0.000000e+00> : vector<16x128xf32>
    %114 = tpu.matmul %111, %113, %cst_45 {dimension_numbers = #tpu.dot_dimension_numbers<[1], [0], [0], [1], [0, 0, 1, 1], [], []>} : vector<16x512xbf16>, vector<512x128xbf16>, vector<16x128xf32> -> vector<16x128xf32>
    %c0_46 = arith.constant 0 : index
    %c0_47 = arith.constant 0 : index
    %c0_48 = arith.constant 0 : index
    %115 = vector.load %arg13[%c0_46, %c0_47, %c0_48] : memref<1x1x128xf32, #tpu.memory_space<vmem>>, vector<1x1x128xf32>
    %116 = vector.shape_cast %115 : vector<1x1x128xf32> to vector<1x128xf32>
    %117 = vector.broadcast %116 : vector<1x128xf32> to vector<16x128xf32>
    %118 = arith.addf %114, %117 : vector<16x128xf32>
    %119 = arith.addf %97, %118 : vector<16x128xf32>
    %120 = arith.addf %119, %3 : vector<16x128xf32>
    %c0_49 = arith.constant 0 : index
    %c0_50 = arith.constant 0 : index
    %121 = vector.load %arg17[%c0_49, %c0_50] : memref<16x128xf32, #tpu.memory_space<vmem>>, vector<16x128xf32>
    tpu.vector_store %arg17[%c0_49, %c0_50], %120 {strides = array<i32>} : memref<16x128xf32, #tpu.memory_space<vmem>>, vector<16x128xf32>,
    %c1_i32_51 = arith.constant 1 : i32
    %122 = arith.cmpi eq, %arg1, %c1_i32_51 : i32
    %123 = arith.extui %122 : i1 to i32
    %c0_i32_52 = arith.constant 0 : i32
    %124 = arith.cmpi ne, %123, %c0_i32_52 : i32
    scf.if %124 {
      %cst_53 = arith.constant dense<0.000000e+00> : vector<16xf32>
      %125 = vector.multi_reduction <add>, %120, %cst_53 [1] : vector<16x128xf32> to vector<16xf32>
      %126 = vector.shape_cast %125 : vector<16xf32> to vector<16x1xf32>
      %cst_54 = arith.constant 1.280000e+02 : f32
      %127 = vector.broadcast %cst_54 : f32 to vector<16x1xf32>
      %128 = arith.divf %126, %127 : vector<16x1xf32>
      %129 = vector.broadcast %128 : vector<16x1xf32> to vector<16x128xf32>
      %130 = arith.subf %120, %129 : vector<16x128xf32>
      %131 = arith.mulf %130, %130 : vector<16x128xf32>
      %cst_55 = arith.constant dense<0.000000e+00> : vector<16xf32>
      %132 = vector.multi_reduction <add>, %131, %cst_55 [1] : vector<16x128xf32> to vector<16xf32>
      %133 = vector.shape_cast %132 : vector<16xf32> to vector<16x1xf32>
      %cst_56 = arith.constant 1.280000e+02 : f32
      %134 = vector.broadcast %cst_56 : f32 to vector<16x1xf32>
      %135 = arith.divf %133, %134 : vector<16x1xf32>
      %136 = vector.broadcast %128 : vector<16x1xf32> to vector<16x128xf32>
      %137 = arith.subf %120, %136 : vector<16x128xf32>
      %cst_57 = arith.constant 9.99999974E-6 : f32
      %138 = vector.broadcast %cst_57 : f32 to vector<16x1xf32>
      %139 = arith.addf %135, %138 : vector<16x1xf32>
      %140 = math.rsqrt %139 : vector<16x1xf32>
      %141 = vector.broadcast %140 : vector<16x1xf32> to vector<16x128xf32>
      %142 = arith.mulf %137, %141 : vector<16x128xf32>
      %c0_58 = arith.constant 0 : index
      %c0_59 = arith.constant 0 : index
      %143 = vector.load %arg14[%c0_58, %c0_59] : memref<1x128xf32, #tpu.memory_space<vmem>>, vector<1x128xf32>
      %144 = vector.broadcast %143 : vector<1x128xf32> to vector<16x128xf32>
      %145 = arith.mulf %142, %144 : vector<16x128xf32>
      %c0_60 = arith.constant 0 : index
      %c0_61 = arith.constant 0 : index
      %146 = vector.load %arg15[%c0_60, %c0_61] : memref<1x128xf32, #tpu.memory_space<vmem>>, vector<1x128xf32>
      %147 = vector.broadcast %146 : vector<1x128xf32> to vector<16x128xf32>
      %148 = arith.addf %145, %147 : vector<16x128xf32>
      %c0_62 = arith.constant 0 : index
      %c0_63 = arith.constant 0 : index
      %c0_64 = arith.constant 0 : index
      %149 = vector.load %arg16[%c0_62, %c0_63, %c0_64] : memref<1x16x128xf32, #tpu.memory_space<vmem>>, vector<1x16x128xf32>
      %150 = vector.shape_cast %149 : vector<1x16x128xf32> to vector<16x128xf32>
      %151 = vector.shape_cast %148 : vector<16x128xf32> to vector<1x16x128xf32>
      tpu.vector_store %arg16[%c0_62, %c0_63, %c0_64], %151 {strides = array<i32>} : memref<1x16x128xf32, #tpu.memory_space<vmem>>, vector<1x16x128xf32>,
    } else {
    }
    return
  }
  func.func @transform_0(%arg0: i32, %arg1: i32) -> (i32, i32, i32) {
    %c0_i32 = arith.constant 0 : i32
    %c0_i32_0 = arith.constant 0 : i32
    %c0_i32_1 = arith.constant 0 : i32
    return %arg0, %c0_i32, %c0_i32_0 : i32, i32, i32
  }
  func.func @transform_1(%arg0: i32, %arg1: i32) -> (i32, i32, i32) {
    %c0_i32 = arith.constant 0 : i32
    %c0_i32_0 = arith.constant 0 : i32
    %c0_i32_1 = arith.constant 0 : i32
    return %arg0, %c0_i32, %c0_i32_0 : i32, i32, i32
  }
  func.func @transform_2(%arg0: i32, %arg1: i32) -> (i32, i32, i32) {
    %c0_i32 = arith.constant 0 : i32
    %c0_i32_0 = arith.constant 0 : i32
    %c0_i32_1 = arith.constant 0 : i32
    return %arg0, %c0_i32, %c0_i32_0 : i32, i32, i32
  }
  func.func @transform_3(%arg0: i32, %arg1: i32) -> (i32, i32, i32) {
    %c0_i32 = arith.constant 0 : i32
    %c0_i32_0 = arith.constant 0 : i32
    %c0_i32_1 = arith.constant 0 : i32
    return %arg0, %c0_i32, %c0_i32_0 : i32, i32, i32
  }
  func.func @transform_4(%arg0: i32, %arg1: i32) -> (i32, i32) {
    %c0_i32 = arith.constant 0 : i32
    %c0_i32_0 = arith.constant 0 : i32
    %c0_i32_1 = arith.constant 0 : i32
    return %c0_i32, %c0_i32_0 : i32, i32
  }
  func.func @transform_5(%arg0: i32, %arg1: i32) -> (i32, i32, i32) {
    %c0_i32 = arith.constant 0 : i32
    %c0_i32_0 = arith.constant 0 : i32
    %c0_i32_1 = arith.constant 0 : i32
    return %arg1, %c0_i32, %c0_i32_0 : i32, i32, i32
  }
  func.func @transform_6(%arg0: i32, %arg1: i32) -> (i32, i32, i32) {
    %c0_i32 = arith.constant 0 : i32
    %c0_i32_0 = arith.constant 0 : i32
    %c0_i32_1 = arith.constant 0 : i32
    return %arg1, %c0_i32, %c0_i32_0 : i32, i32, i32
  }
  func.func @transform_7(%arg0: i32, %arg1: i32) -> (i32, i32, i32) {
    %c0_i32 = arith.constant 0 : i32
    %c0_i32_0 = arith.constant 0 : i32
    %c0_i32_1 = arith.constant 0 : i32
    return %arg1, %c0_i32, %c0_i32_0 : i32, i32, i32
  }
  func.func @transform_8(%arg0: i32, %arg1: i32) -> (i32, i32, i32) {
    %c0_i32 = arith.constant 0 : i32
    %c0_i32_0 = arith.constant 0 : i32
    %c0_i32_1 = arith.constant 0 : i32
    return %arg1, %c0_i32, %c0_i32_0 : i32, i32, i32
  }
  func.func @transform_9(%arg0: i32, %arg1: i32) -> (i32, i32, i32) {
    %c0_i32 = arith.constant 0 : i32
    %c0_i32_0 = arith.constant 0 : i32
    %c0_i32_1 = arith.constant 0 : i32
    return %arg1, %c0_i32, %c0_i32_0 : i32, i32, i32
  }
  func.func @transform_10(%arg0: i32, %arg1: i32) -> (i32, i32, i32) {
    %c0_i32 = arith.constant 0 : i32
    %c0_i32_0 = arith.constant 0 : i32
    %c0_i32_1 = arith.constant 0 : i32
    return %arg1, %c0_i32, %c0_i32_0 : i32, i32, i32
  }
  func.func @transform_11(%arg0: i32, %arg1: i32) -> (i32, i32, i32) {
    %c0_i32 = arith.constant 0 : i32
    %c0_i32_0 = arith.constant 0 : i32
    %c0_i32_1 = arith.constant 0 : i32
    return %arg1, %c0_i32, %c0_i32_0 : i32, i32, i32
  }
  func.func @transform_12(%arg0: i32, %arg1: i32) -> (i32, i32) {
    %c0_i32 = arith.constant 0 : i32
    %c0_i32_0 = arith.constant 0 : i32
    %c0_i32_1 = arith.constant 0 : i32
    return %c0_i32, %c0_i32_0 : i32, i32
  }
  func.func @transform_13(%arg0: i32, %arg1: i32) -> (i32, i32) {
    %c0_i32 = arith.constant 0 : i32
    %c0_i32_0 = arith.constant 0 : i32
    %c0_i32_1 = arith.constant 0 : i32
    return %c0_i32, %c0_i32_0 : i32, i32
  }
  func.func @transform_14(%arg0: i32, %arg1: i32) -> (i32, i32, i32) {
    %c0_i32 = arith.constant 0 : i32
    %c0_i32_0 = arith.constant 0 : i32
    %c0_i32_1 = arith.constant 0 : i32
    return %arg0, %c0_i32, %c0_i32_0 : i32, i32, i32
  }
}

</mosaic_0001>

<bundles_post_ra>
// kernel: tpu_custom_call.1
= control target key start
LH: loop header
LB: loop body
LE: loop exit
PB: predicated region body
PF: predicated region fallthrough
CT: control target
= control target key end

     0   :  { %s4825_s0 = inlined_call_operand.hbm [shape: f32[2,16,128], index: 0, kind: input, shape index: {}]   ;;  %s4826_s1 = inlined_call_operand.hbm [shape: f32[2,16,256], index: 1, kind: input, shape index: {}]   ;;  %s4827_s2 = inlined_call_operand.hbm [shape: f32[2,16,256], index: 2, kind: input, shape index: {}]   ;;  %s4828_s3 = inlined_call_operand.hbm [shape: f32[2,16,256], index: 3, kind: input, shape index: {}]   ;;  %s4829_s4 = inlined_call_operand.hbm [shape: f32[64,64], index: 4, kind: input, shape index: {}]   ;;  %s4830_s5 = inlined_call_operand.vmem [shape: f32[2,1,128], index: 5, kind: input, shape index: {}]   ;;  %s4831_s6 = inlined_call_operand.vmem [shape: f32[2,1,128], index: 6, kind: input, shape index: {}]   ;;  %s4832_s7 = inlined_call_operand.hbm [shape: bf16[2,128,896], index: 7, kind: input, shape index: {}]   ;;  %s4833_s8 = inlined_call_operand.vmem [shape: f32[2,1,896], index: 8, kind: input, shape index: {}]   ;;  %s4834_s9 = inlined_call_operand.hbm [shape: bf16[2,128,128], index: 9, kind: input, shape index: {}]   ;;  %s4835_s10 = inlined_call_operand.hbm [shape: bf16[2,512,128], index: 10, kind: input, shape index: {}]   ;;  %s4836_s11 = inlined_call_operand.vmem [shape: f32[2,1,128], index: 11, kind: input, shape index: {}]   ;;  %s4837_s12 = inlined_call_operand.vmem [shape: f32[1,128], index: 12, kind: input, shape index: {}]   ;;  %s4838_s13 = inlined_call_operand.vmem [shape: f32[1,128], index: 13, kind: input, shape index: {}]   ;;  %s4839_s14 = inlined_call_operand.hbm [shape: f32[2,16,128], index: 14, kind: output, shape index: {}]  }
   0x1   :  { %4883 = sst [smem:[#allocation43_spill]] %s4825_s0 }
   0x2   :  { %4884 = sst [smem:[#allocation44_spill]] %s4826_s1 }
   0x3   :  { %4885 = sst [smem:[#allocation45_spill]] %s4827_s2 }
   0x4   :  { %4886 = sst [smem:[#allocation46_spill]] %s4828_s3 }
   0x5   :  { %4887 = sst [smem:[#allocation47_spill]] %s4829_s4 }
   0x6   :  { %4888 = sst [smem:[#allocation48_spill]] %s4830_s5 }
   0x7   :  { %4889 = sst [smem:[#allocation49_spill]] %s4831_s6 }
   0x8   :  { %4890 = sst [smem:[#allocation50_spill]] %s4832_s7 }
   0x9   :  { %4891 = sst [smem:[#allocation51_spill]] %s4833_s8 }
   0xa   :  { %4892 = sst [smem:[#allocation52_spill]] %s4834_s9 }
   0xb   :  { %4893 = sst [smem:[#allocation53_spill]] %s4836_s11 }
   0xc   :  { %4894 = sst [smem:[#allocation54_spill]] %s4837_s12 }
   0xd   :  { %4895 = sst [smem:[#allocation55_spill]] %s4838_s13 }
   0xe   :  { %4896 = sst [smem:[#allocation56_spill]] %s4839_s14 }
   0xf   :  { %19 = vsyncpa [#allocation4], 0 }
  0x10   :  { %21 = vsyncpa [#allocation4 + $0x1], 0 }
  0x11   :  { %22 = vsyncpa [#allocation7], 0 }
  0x12   :  { %24 = vsyncpa [#allocation7 + $0x1], 0 }
  0x13   :  { %25 = vsyncpa [#allocation10], 0 }
  0x14   :  { %27 = vsyncpa [#allocation10 + $0x1], 0 }
  0x15   :  { %28 = vsyncpa [#allocation13], 0 }
  0x16   :  { %30 = vsyncpa [#allocation13 + $0x1], 0 }
  0x17   :  { %31 = vsyncpa [#allocation16], 0 }
  0x18   :  { %33 = vsyncpa [#allocation16 + $0x1], 0 }
  0x19   :  { %34 = vsyncpa [#allocation5], 0 }
  0x1a   :  { %36 = vsyncpa [#allocation5 + $0x1], 0  ;;  %s3900_s29 = smov 0   ;;  %s3902_s30 = smov 0  }
  0x1b   :  { %s3904_s15 = smov 0   ;;  %s3906_s16 = smov 0  }
  0x1c   :  { %s3908_s17 = smov 0   ;;  %s3910_s18 = smov 0  }
  0x1d   :  { %s3912_s19 = smov 0   ;;  %s3914_s20 = smov 0  }
  0x1e   :  { %s3916_s21 = smov 0   ;;  %s3918_s22 = smov 0  }
  0x1f   :  { %s3920_s23 = smov 0  }
  0x20 LB: > { %4897 = sst [smem:[#allocation25_spill]] %s3760_s30  ;;  %s3954_s24 = sadd.s32 4294967295, %s3796_s23   ;;  %s3796_s23 = sphi %s3920_s23, %s42_s23   ;;  %s3792_s22 = sphi %s3918_s22, %s4990_s22   ;;  %s3788_s21 = sphi %s3916_s21, %s4989_s21   ;;  %s3784_s20 = sphi %s3914_s20, %s4988_s20   ;;  %s3780_s19 = sphi %s3912_s19, %s4987_s19   ;;  %s3776_s18 = sphi %s3910_s18, %s4984_s18   ;;  %s3772_s17 = sphi %s3908_s17, %s4983_s17   ;;  %s3768_s16 = sphi %s3906_s16, %s4982_s16   ;;  %s3764_s15 = sphi %s3904_s15, %s4981_s15   ;;  %s3760_s30 = sphi %s3902_s30, %s4980_s30   ;;  %s3756_s29 = sphi %s3900_s29, %s4979_s29  }
  0x21   : > { %4898 = sst [smem:[#allocation26_spill]] %s3764_s15  ;;  %s2704_s25 = sadd.s32 4294967294, %s3796_s23  }
  0x22   : > { %4899 = sst [smem:[#allocation27_spill]] %s3768_s16  ;;  %p74_p0 = scmp.ne.s32.totalorder %s3772_s17, %s3768_s16 }
  0x23   : > { %4900 = sst [smem:[#allocation28_spill]] %s3772_s17  ;;  %p4843_p1 = scmp.eq.s32.totalorder %s3954_s24, 0 }
  0x24   : > { %4901 = sst [smem:[#allocation29_spill]] %s3776_s18  ;;  %p251_p2 = scmp.ne.s32.totalorder %s3760_s30, %s3756_s29 }
  0x25   : > { %4902 = sst [smem:[#allocation30_spill]] %s3780_s19  ;;  %p3964_p4 = por %p4843_p1, %p74_p0 }
  0x26   : > { %4903 = sst [smem:[#allocation31_spill]] %s3784_s20  ;;  %p427_p5 = scmp.eq.s32.totalorder %s2704_s25, 3 }
  0x27   : > { %4904 = sst [smem:[#allocation32_spill]] %s3796_s23  ;;  %p3970_p6 = por %p251_p2, %p4843_p1 }
  0x28   : > { %4905 = sst [smem:[#allocation33_spill]] %s3954_s24  ;;  %p2705_p7 = scmp.ge.s32.totalorder %s3796_s23, 1 }
  0x29   : > { %s4906_s26 = scalar_select %p3964_p4, 1, 0 }
  0x2a   : > { %s4908_s27 = scalar_select %p3970_p6, 1, 0 }
  0x2b   : > { %4907 = sst [smem:[#allocation34_spill]] %s4906_s26  ;;  %p3975_p8 = por %p427_p5, %p74_p0 }
  0x2c   : > { %4909 = sst [smem:[#allocation35_spill]] %s4908_s27  ;;  %p434_p9 = scmp.lt.s32.totalorder %s3796_s23, 5 }
  0x2d   : > { %s4910_s28 = scalar_select %p3975_p8, 1, 0 }
  0x2e   : > { %p3980_p10 = pnand %p2705_p7, %p434_p9  ;;  %s3798_s16 = smov [#allocation11]  }
  0x2f   : > { %4911 = sst [smem:[#allocation36_spill]] %s4910_s28  ;;  %s446_s14 = sshll.u32 %s3798_s16, 4  ;;  %s447_s14 = int_to_ptr.vmem [resolvable:$true] %s446_s14 }
  0x30   : > { %s4912_s29 = scalar_select %p3980_p10, 1, 0 }
  0x31   : > { %p3037_p11 = pneg %p3980_p10  ;;  %s4915_s4 = sld [smem:[#allocation47_spill]] }
  0x32   : > { %4913 = sst [smem:[#allocation37_spill]] %s4912_s29 }
  0x33   : > { %p3988_p12 = pnand %p3037_p11, %p4843_p1 }
  0x35   : > { %p3418_p0 = pneg %p3988_p12 }
  0x37   : > { %s3416_s12 = scalar_lea.hbm %s4915_s4, 1024 }
  0x38   : > { %p3417_p13 = scmp.ne.s32.totalorder %s4915_s4, %s3416_s12  ;;  %p3423_p7 = scmp.lt.u32.totalorder %s3416_s12, %s4915_s4 }
  0x3a   : > { %p3419_p2 = pnand %p3418_p0, %p3417_p13 }
  0x3c   : > { %p3420_p5 = pneg %p3419_p2 }
  0x3e   : > { %p3425_p9 = pnand %p3423_p7, %p3420_p5 }
  0x40   : > { %3428 = shalt.err (!%p3425_p9)
}
  0x41   : > { %s3429_s5 = scalar_lea.vmem %s447_s14, 1024  ;;  %p3437_p8 = scmp.lt.s32.totalorder %s447_s14, %s447_s14 }
  0x42   : > { %p3430_p11 = scmp.ne.s32.totalorder %s447_s14, %s3429_s5  ;;  %p3438_p6 = scmp.lt.s32.totalorder %s3429_s5, %s3429_s5 }
  0x44   : > { %p3432_p1 = pnand %p3430_p11, %p3418_p0  ;;  %p3439_p4 = por %p3438_p6, %p3437_p8 }
  0x46   : > { %p3433_p3 = pneg %p3432_p1 }
  0x48   : > { %p3440_p10 = pnand %p3439_p4, %p3433_p3 }
  0x4a   : > { %3443 = shalt.err (!%p3440_p10)
}
  0x4b   : > { %s4847_s8 = smov 128   ;;  %s4848_s6 = smov 8  }
  0x4c   : > { %3040 = dma.hbm_to_vmem [thread:$0]  (!%p3988_p12), %s4915_s4, 1024, %s447_s14, [#allocation10], %s4847_s8, %s4847_s8, %s4848_s6  }
  0x4d   : > { %p68_p1 = scmp.ne.s32.totalorder %s3776_s18, %s3772_s17  ;;  %p4857_p3 = scmp.eq.s32.totalorder %s3796_s23, 0 }
  0x4e   : > { %p4856_p4 = scmp.lt.s32.totalorder %s3796_s23, 4  ;;  %p4916_p6 = scmp.eq.s32.totalorder %s3954_s24, 3 }
  0x4f   : > { %s4024_s28 = sand.u32 1, %s3776_s18   ;;  %p70_p10 = por %p4857_p3, %p68_p1 }
  0x50   : > { %p4019_p8 = por %p4916_p6, %p68_p1  ;;  %s4029_s25 = sand.u32 1, %s3796_s23  }
  0x51   : > { %s4032_s16 = sshll.u32 %s4024_s28, 5  ;;  %p4036_p12 = pnand %p4856_p4, %p70_p10 }
  0x52   : > { %s4917_s13 = scalar_select %p4019_p8, 1, 0 }
  0x53   : > { %s4919_s14 = scalar_select %p4036_p12, 1, 0 }
  0x54   : > { %4918 = sst [smem:[#allocation38_spill]] %s4917_s13  ;;  %s4041_s5 = sshll.u32 %s3792_s22, 9 }
  0x55   : > { %s491_s11 = scalar_lea.vmem [#allocation6], %s4032_s16  ;;  %s4920_s1 = sld [smem:[#allocation44_spill]] }
  0x56   : > { %s498_s8 = sshll.u32 %s491_s11, 4  ;;  %p4057_p0 = pneg %p4036_p12  ;;  %s4050_s8 = int_to_ptr.vmem [resolvable:$true] %s498_s8 }
  0x58   : > { %s4921_s19 = scalar_select %p4057_p0, 1, 0 }
  0x5b   : > { %s4048_s20 = scalar_lea.hbm %s4920_s1, %s4041_s5  ;;  %s3449_s11 = scalar_lea.hbm %s4920_s1, 1024 }
  0x5c   : > { %s3444_s13 = scalar_lea.hbm %s4048_s20, 512  ;;  %p3450_p7 = scmp.lt.u32.totalorder %s4048_s20, %s4920_s1 }
  0x5d   : > { %p3445_p13 = scmp.ne.s32.totalorder %s4048_s20, %s3444_s13  ;;  %p3451_p9 = scmp.lt.u32.totalorder %s3449_s11, %s3444_s13 }
  0x5e   : > { %p3453_p1 = scmp.lt.u32.totalorder %s3444_s13, %s4048_s20 }
  0x5f   : > { %p3447_p2 = pnand %p4057_p0, %p3445_p13  ;;  %p3452_p11 = por %p3451_p9, %p3450_p7 }
  0x61   : > { %p3448_p5 = pneg %p3447_p2  ;;  %p3454_p6 = por %p3453_p1, %p3452_p11 }
  0x63   : > { %p3455_p10 = pnand %p3454_p6, %p3448_p5 }
  0x65   : > { %3458 = shalt.err (!%p3455_p10)
}
  0x66   : > { %s3459_s4 = scalar_lea.vmem %s4050_s8, 512  ;;  %s3801_s6 = smov [#allocation6]  }
  0x67   : > { %p3460_p13 = scmp.ne.s32.totalorder %s4050_s8, %s3459_s4  ;;  %s3464_s12 = sshll.u32 %s3801_s6, 4  ;;  %s3465_s12 = int_to_ptr.vmem [resolvable:$false] %s3464_s12 }
  0x68   : > { %s3466_s24 = scalar_lea.vmem %s3465_s12, 1024  ;;  %p3467_p3 = scmp.lt.s32.totalorder %s4050_s8, %s3465_s12 }
  0x69   : > { %p3462_p2 = pnand %p3460_p13, %p4057_p0  ;;  %p3468_p8 = scmp.lt.s32.totalorder %s3466_s24, %s3459_s4 }
  0x6b   : > { %p3463_p4 = pneg %p3462_p2  ;;  %p3469_p7 = por %p3468_p8, %p3467_p3 }
  0x6d   : > { %p3470_p9 = pnand %p3469_p7, %p3463_p4 }
  0x6f   : > { %3473 = shalt.err (!%p3470_p9)
}
  0x70   : > { %s4859_s27 = smov 256   ;;  %s4861_s13 = smov 16  }
  0x71   : > { %s4922_s4 = scalar_lea.sflag [#allocation7], %s4029_s25  ;;  %s238_s11 = sadd.s32 1, %s3764_s15 }
  0x72   : > { %3047 = dma.hbm_to_vmem [thread:$0]  (!%p4036_p12), %s4048_s20, 512, %s4050_s8, %s4922_s4, %s4859_s27, %s4859_s27, %s4861_s13  }
  0x73   : > { %s51_s6 = sadd.s32 1, %s3788_s21  ;;  %p245_p3 = scmp.ne.s32.totalorder %s3764_s15, %s3760_s30 }
  0x74   : > { %p52_p4 = scmp.ge.s32.totalorder %s51_s6, 2  ;;  %p4923_p8 = scmp.eq.s32.totalorder %s3796_s23, 0 }
  0x75   : > { %s4096_s24 = sand.u32 1, %s3764_s15   ;;  %s4926_s1 = sadd.s32 1, %s3792_s22 }
  0x76   : > { %p4091_p5 = por %p245_p3, %p4923_p8  ;;  %s4992_s6 = smov (%p52_p4, %s51_s6), 0 }
  0x77   : > { %4925 = sst [smem:[#allocation39_spill]] %s4992_s6  ;;  %s4994_s1 = smov (!%p52_p4, %s4926_s1), %s3792_s22 }
  0x78   : > { %s235_s20 = ssub.s32 %s3788_s21, %s4992_s6  ;;  %s3013_s8 = smul.u32 448, %s4096_s24 }
  0x79   : > { %p56_p11 = scmp.ge.s32.totalorder %s4994_s1, 2  ;;  %p236_p1 = scmp.eq.s32.totalorder %s235_s20, 0 }
  0x7a   : > { %s3014_s4 = smul.u32 7168, %s3788_s21  ;;  %s4929_s7 = sld [smem:[#allocation50_spill]] }
  0x7b   : > { %s4996_s1 = smov (%p56_p11, %s4994_s1), 0  ;;  %s566_s6 = scalar_lea.vmem [#allocation12], %s3013_s8 }
  0x7c   : > { %4927 = sst [smem:[#allocation40_spill]] %s4996_s1  ;;  %s58_s13 = ssub.s32 %s3792_s22, %s4996_s1 }
  0x7d   : > { %s4110_s27 = scalar_select %p236_p1, %s3764_s15, %s238_s11  }
  0x7e   : > { %p59_p6 = scmp.eq.s32.totalorder %s58_s13, 0  ;;  %s573_s29 = sshll.u32 %s566_s6, 4  ;;  %s4119_s29 = int_to_ptr.vmem [resolvable:$true] %s573_s29 }
  0x7f   : > { %4928 = sst [smem:[#allocation41_spill]] %s4110_s27  ;;  %p4930_p10 = scmp.lt.s32.totalorder %s3796_s23, 4 }
  0x80   : > { %s4117_s17 = scalar_lea.hbm %s4929_s7, %s3014_s4  ;;  %s4932_s20 = sadd.s32 1, %s3776_s18 }
  0x81   : > { %p4125_p13 = pnand %p4930_p10, %p4091_p5  ;;  %s563_s26 = scalar_lea.sflag [#allocation13], %s4029_s25 }
  0x82   : > { %s4132_s30 = scalar_select %p59_p6, %s3776_s18, %s4932_s20  }
  0x83   : > { %s4931_s11 = scalar_select %p4125_p13, 1, 0 }
  0x84   : > { %4933 = sst [smem:[#allocation42_spill]] %s4132_s30  ;;  %s3474_s4 = scalar_lea.hbm %s4117_s17, 7168 }
  0x85   : > { %p3475_p2 = scmp.ne.s32.totalorder %s4117_s17, %s3474_s4  ;;  %p4139_p7 = pneg %p4125_p13 }
  0x86   : > { %s3479_s8 = scalar_lea.hbm %s4929_s7, 14336  ;;  %p3480_p4 = scmp.lt.u32.totalorder %s4117_s17, %s4929_s7 }
  0x87   : > { %s4934_s13 = scalar_select %p4139_p7, 1, 0 }
  0x88   : > { %p3477_p9 = pnand %p4139_p7, %p3475_p2  ;;  %p3481_p8 = scmp.lt.u32.totalorder %s3479_s8, %s3474_s4 }
  0x89   : > { %p3483_p11 = scmp.lt.u32.totalorder %s3474_s4, %s4117_s17 }
  0x8a   : > { %p3478_p3 = pneg %p3477_p9  ;;  %p3482_p5 = por %p3481_p8, %p3480_p4 }
  0x8c   : > { %p3484_p1 = por %p3483_p11, %p3482_p5 }
  0x8e   : > { %p3485_p6 = pnand %p3484_p1, %p3478_p3 }
  0x90   : > { %3488 = shalt.err (!%p3485_p6)
}
  0x91   : > { %s3489_s20 = scalar_lea.vmem %s4119_s29, 7168  ;;  %s3804_s6 = smov [#allocation12]  }
  0x92   : > { %p3490_p10 = scmp.ne.s32.totalorder %s4119_s29, %s3489_s20  ;;  %s3494_s12 = sshll.u32 %s3804_s6, 4  ;;  %s3495_s12 = int_to_ptr.vmem [resolvable:$false] %s3494_s12 }
  0x93   : > { %s3496_s1 = scalar_lea.vmem %s3495_s12, 14336  ;;  %p3497_p12 = scmp.lt.s32.totalorder %s4119_s29, %s3495_s12 }
  0x94   : > { %p3492_p2 = pnand %p3490_p10, %p4139_p7  ;;  %p3498_p0 = scmp.lt.s32.totalorder %s3496_s1, %s3489_s20 }
  0x96   : > { %p3493_p9 = pneg %p3492_p2  ;;  %p3499_p4 = por %p3498_p0, %p3497_p12 }
  0x98   : > { %p3500_p8 = pnand %p3499_p4, %p3493_p9 }
  0x9a   : > { %3503 = shalt.err (!%p3500_p8)
}
  0x9b   : > { %s3805_s27 = smov 448   ;;  %s3806_s4 = smov 28  }
  0x9c   : > { %3056 = dma.hbm_to_vmem [thread:$0]  (!%p4125_p13), %s4117_s17, 7168, %s4119_s29, %s563_s26, %s3805_s27, %s3805_s27, %s3806_s4  }
  0x9d   : > { %s2708_s8 = sshll.u32 %s4024_s28, 4  ;;  %s2852_s6 = sshll.u32 %s3792_s22, 8 }
  0x9e   : > { %s4935_s0 = sld [smem:[#allocation43_spill]]  ;;  %s470_s7 = scalar_lea.vmem [#allocation3], %s2708_s8 }
  0x9f   : > { %s477_s30 = sshll.u32 %s470_s7, 4  ;;  %s4936_s2 = sld [smem:[#allocation45_spill]]  ;;  %s4171_s30 = int_to_ptr.vmem [resolvable:$true] %s477_s30 }
  0xa0   : > { %s467_s17 = scalar_lea.sflag [#allocation4], %s4024_s28  ;;  %p4937_p0 = scmp.ne.s32.totalorder %s4921_s19, 0 }
  0xa4   : > { %s4169_s1 = scalar_lea.hbm %s4935_s0, %s2852_s6  ;;  %s3509_s6 = scalar_lea.hbm %s4935_s0, 512 }
  0xa5   : > { %s4177_s23 = scalar_lea.hbm %s4936_s2, %s4041_s5  ;;  %s3504_s29 = scalar_lea.hbm %s4169_s1, 256 }
  0xa6   : > { %p3505_p12 = scmp.ne.s32.totalorder %s4169_s1, %s3504_s29  ;;  %p3510_p11 = scmp.lt.u32.totalorder %s4169_s1, %s4935_s0 }
  0xa7   : > { %p3511_p1 = scmp.lt.u32.totalorder %s3509_s6, %s3504_s29  ;;  %p3513_p10 = scmp.lt.u32.totalorder %s3504_s29, %s4169_s1 }
  0xa8   : > { %p3507_p3 = pnand %p3505_p12, %p4937_p0 }
  0xa9   : > { %p3512_p6 = por %p3511_p1, %p3510_p11 }
  0xaa   : > { %p3508_p5 = pneg %p3507_p3 }
  0xab   : > { %p3514_p2 = por %p3513_p10, %p3512_p6 }
  0xad   : > { %p3515_p9 = pnand %p3514_p2, %p3508_p5 }
  0xaf   : > { %3518 = shalt.err (!%p3515_p9)
}
  0xb0   : > { %s3519_s7 = scalar_lea.vmem %s4171_s30, 256  ;;  %s3807_s15 = smov [#allocation3]  }
  0xb1   : > { %p3520_p4 = scmp.ne.s32.totalorder %s4171_s30, %s3519_s7  ;;  %s3524_s18 = sshll.u32 %s3807_s15, 4  ;;  %s3525_s18 = int_to_ptr.vmem [resolvable:$false] %s3524_s18 }
  0xb2   : > { %s3526_s12 = scalar_lea.vmem %s3525_s18, 512  ;;  %p3527_p3 = scmp.lt.s32.totalorder %s4171_s30, %s3525_s18 }
  0xb3   : > { %p3522_p8 = pnand %p3520_p4, %p4937_p0  ;;  %p3528_p13 = scmp.lt.s32.totalorder %s3526_s12, %s3519_s7 }
  0xb5   : > { %p3523_p12 = pneg %p3522_p8  ;;  %p3529_p11 = por %p3528_p13, %p3527_p3 }
  0xb7   : > { %p3530_p1 = pnand %p3529_p11, %p3523_p12 }
  0xb9   : > { %3533 = shalt.err (!%p3530_p1)
}
  0xba   : > { %p4938_p5 = scmp.ne.s32.totalorder %s4919_s14, 0  ;;  %s4939_s29 = smov 8  }
  0xbb   : > { %s4940_s27 = smov 128   ;;  %s512_s4 = scalar_lea.vmem [#allocation8], %s4032_s16 }
  0xbc   : > { %3044 = dma.hbm_to_vmem [thread:$0]  (!%p4938_p5), %s4169_s1, 256, %s4171_s30, %s467_s17, %s4940_s27, %s4940_s27, %s4939_s29  }
  0xbd   : > { %s519_s6 = sshll.u32 %s512_s4, 4  ;;  %s3534_s20 = scalar_lea.hbm %s4177_s23, 512  ;;  %s4207_s6 = int_to_ptr.vmem [resolvable:$true] %s519_s6 }
  0xbe   : > { %p3535_p13 = scmp.ne.s32.totalorder %s4177_s23, %s3534_s20  ;;  %s3539_s7 = scalar_lea.hbm %s4936_s2, 1024 }
  0xbf   : > { %p3540_p2 = scmp.lt.u32.totalorder %s4177_s23, %s4936_s2  ;;  %p3541_p9 = scmp.lt.u32.totalorder %s3539_s7, %s3534_s20 }
  0xc0   : > { %p3537_p6 = pnand %p3535_p13, %p4937_p0  ;;  %p3543_p8 = scmp.lt.u32.totalorder %s3534_s20, %s4177_s23 }
  0xc1   : > { %p3542_p4 = por %p3541_p9, %p3540_p2 }
  0xc2   : > { %p3538_p10 = pneg %p3537_p6 }
  0xc3   : > { %p3544_p12 = por %p3543_p8, %p3542_p4 }
  0xc5   : > { %p3545_p3 = pnand %p3544_p12, %p3538_p10 }
  0xc7   : > { %3548 = shalt.err (!%p3545_p3)
}
  0xc8   : > { %s3549_s30 = scalar_lea.vmem %s4207_s6, 512  ;;  %s3808_s1 = smov [#allocation8]  }
  0xc9   : > { %p3550_p11 = scmp.ne.s32.totalorder %s4207_s6, %s3549_s30  ;;  %s3554_s17 = sshll.u32 %s3808_s1, 4  ;;  %s3555_s17 = int_to_ptr.vmem [resolvable:$false] %s3554_s17 }
  0xca   : > { %s3556_s12 = scalar_lea.vmem %s3555_s17, 1024  ;;  %p3557_p6 = scmp.lt.s32.totalorder %s4207_s6, %s3555_s17 }
  0xcb   : > { %p3552_p1 = pnand %p3550_p11, %p4937_p0  ;;  %p3558_p7 = scmp.lt.s32.totalorder %s3556_s12, %s3549_s30 }
  0xcd   : > { %p3553_p13 = pneg %p3552_p1  ;;  %p3559_p2 = por %p3558_p7, %p3557_p6 }
  0xcf   : > { %p3560_p9 = pnand %p3559_p2, %p3553_p13 }
  0xd1   : > { %3563 = shalt.err (!%p3560_p9)
}
  0xd2   : > { %s4941_s29 = smov 16   ;;  %s4942_s27 = smov 256  }
  0xd3   : > { %s4943_s4 = scalar_lea.sflag [#allocation7], %s4029_s25  ;;  %s4944_s3 = sld [smem:[#allocation46_spill]] }
  0xd4   : > { %3050 = dma.hbm_to_vmem [thread:$0]  (!%p4938_p5), %s4177_s23, 512, %s4207_s6, %s4943_s4, %s4942_s27, %s4942_s27, %s4941_s29  }
  0xd5   : > { %s533_s7 = scalar_lea.vmem [#allocation9], %s4032_s16  ;;  %s2721_s18 = sshll.u32 %s4096_s24, 6 }
  0xd6   : > { %s540_s15 = sshll.u32 %s533_s7, 4  ;;  %s530_s30 = scalar_lea.sflag [#allocation10], %s4029_s25  ;;  %s4242_s15 = int_to_ptr.vmem [resolvable:$true] %s540_s15 }
  0xd9   : > { %s4239_s28 = scalar_lea.hbm %s4944_s3, %s4041_s5  ;;  %s3569_s5 = scalar_lea.hbm %s4944_s3, 1024 }
  0xda   : > { %s3564_s1 = scalar_lea.hbm %s4239_s28, 512  ;;  %p3570_p8 = scmp.lt.u32.totalorder %s4239_s28, %s4944_s3 }
  0xdb   : > { %p3565_p7 = scmp.ne.s32.totalorder %s4239_s28, %s3564_s1  ;;  %p3571_p12 = scmp.lt.u32.totalorder %s3569_s5, %s3564_s1 }
  0xdc   : > { %p3573_p11 = scmp.lt.u32.totalorder %s3564_s1, %s4239_s28 }
  0xdd   : > { %p3567_p10 = pnand %p3565_p7, %p4937_p0  ;;  %p3572_p3 = por %p3571_p12, %p3570_p8 }
  0xdf   : > { %p3568_p4 = pneg %p3567_p10  ;;  %p3574_p1 = por %p3573_p11, %p3572_p3 }
  0xe1   : > { %p3575_p13 = pnand %p3574_p1, %p3568_p4 }
  0xe3   : > { %3578 = shalt.err (!%p3575_p13)
}
  0xe4   : > { %s3579_s16 = scalar_lea.vmem %s4242_s15, 512  ;;  %s3809_s4 = smov [#allocation9]  }
  0xe5   : > { %p3580_p6 = scmp.ne.s32.totalorder %s4242_s15, %s3579_s16  ;;  %s3584_s20 = sshll.u32 %s3809_s4, 4  ;;  %s3585_s20 = int_to_ptr.vmem [resolvable:$false] %s3584_s20 }
  0xe6   : > { %s3586_s8 = scalar_lea.vmem %s3585_s20, 1024  ;;  %p3587_p7 = scmp.lt.s32.totalorder %s4242_s15, %s3585_s20 }
  0xe7   : > { %p3582_p2 = pnand %p3580_p6, %p4937_p0  ;;  %p3588_p10 = scmp.lt.s32.totalorder %s3586_s8, %s3579_s16 }
  0xe9   : > { %p3583_p9 = pneg %p3582_p2  ;;  %p3589_p8 = por %p3588_p10, %p3587_p7 }
  0xeb   : > { %p3590_p12 = pnand %p3589_p8, %p3583_p9 }
  0xed   : > { %3593 = shalt.err (!%p3590_p12)
}
  0xee   : > { %3053 = dma.hbm_to_vmem [thread:$0]  (!%p4938_p5), %s4239_s28, 512, %s4242_s15, %s530_s30, %s4942_s27, %s4942_s27, %s4941_s29  }
  0xef   : > { %s2856_s19 = sshll.u32 %s3788_s21, 10  ;;  %s4945_s9 = sld [smem:[#allocation52_spill]] }
  0xf0   : > { %s594_s14 = scalar_lea.vmem [#allocation14], %s2721_s18  ;;  %p4946_p4 = scmp.ne.s32.totalorder %s4934_s13, 0 }
  0xf1   : > { %s601_s6 = sshll.u32 %s594_s14, 4  ;;  %s4280_s6 = int_to_ptr.vmem [resolvable:$true] %s601_s6 }
  0xf5   : > { %s4276_s23 = scalar_lea.hbm %s4945_s9, %s2856_s19  ;;  %s3599_s28 = scalar_lea.hbm %s4945_s9, 2048 }
  0xf6   : > { %s3594_s5 = scalar_lea.hbm %s4276_s23, 1024  ;;  %p3600_p11 = scmp.lt.u32.totalorder %s4276_s23, %s4945_s9 }
  0xf7   : > { %p3595_p0 = scmp.ne.s32.totalorder %s4276_s23, %s3594_s5  ;;  %p3601_p1 = scmp.lt.u32.totalorder %s3599_s28, %s3594_s5 }
  0xf8   : > { %p3603_p6 = scmp.lt.u32.totalorder %s3594_s5, %s4276_s23 }
  0xf9   : > { %p3597_p3 = pnand %p3595_p0, %p4946_p4  ;;  %p3602_p13 = por %p3601_p1, %p3600_p11 }
  0xfb   : > { %p3598_p5 = pneg %p3597_p3  ;;  %p3604_p2 = por %p3603_p6, %p3602_p13 }
  0xfd   : > { %p3605_p9 = pnand %p3604_p2, %p3598_p5 }
  0xff   : > { %3608 = shalt.err (!%p3605_p9)
}
 0x100   : > { %s3609_s18 = scalar_lea.vmem %s4280_s6, 1024  ;;  %s3810_s17 = smov [#allocation14]  }
 0x101   : > { %p3610_p7 = scmp.ne.s32.totalorder %s4280_s6, %s3609_s18  ;;  %s3614_s12 = sshll.u32 %s3810_s17, 4  ;;  %s3615_s12 = int_to_ptr.vmem [resolvable:$false] %s3614_s12 }
 0x102   : > { %s3616_s16 = scalar_lea.vmem %s3615_s12, 2048  ;;  %p3617_p12 = scmp.lt.s32.totalorder %s4280_s6, %s3615_s12 }
 0x103   : > { %p3612_p10 = pnand %p3610_p7, %p4946_p4  ;;  %p3618_p0 = scmp.lt.s32.totalorder %s3616_s16, %s3609_s18 }
 0x105   : > { %p3613_p8 = pneg %p3612_p10  ;;  %p3619_p3 = por %p3618_p0, %p3617_p12 }
 0x107   : > { %p3620_p11 = pnand %p3619_p3, %p3613_p8 }
 0x109   : > { %3623 = shalt.err (!%p3620_p11)
}
 0x10a   : > { %s3811_s4 = smov 64   ;;  %s3812_s20 = smov 4  }
 0x10b   : > { %p4947_p5 = scmp.ne.s32.totalorder %s4931_s11, 0  ;;  %s2724_s8 = sshll.u32 %s4096_s24, 8 }
 0x10c   : > { %s2857_s19 = sshll.u32 %s3788_s21, 12  ;;  %s615_s5 = scalar_lea.vmem [#allocation15], %s2724_s8 }
 0x10d   : > { %3059 = dma.hbm_to_vmem [thread:$0]  (!%p4947_p5), %s4276_s23, 1024, %s4280_s6, %s563_s26, %s3811_s4, %s3811_s4, %s3812_s20  }
 0x10e   : > { %s4313_s14 = scalar_lea.hbm %s4835_s10, %s2857_s19  ;;  %s622_s29 = sshll.u32 %s615_s5, 4  ;;  %s4315_s29 = int_to_ptr.vmem [resolvable:$true] %s622_s29 }
 0x10f   : > { %s612_s27 = scalar_lea.sflag [#allocation16], %s4096_s24  ;;  %s3624_s28 = scalar_lea.hbm %s4313_s14, 4096 }
 0x110   : > { %p3625_p1 = scmp.ne.s32.totalorder %s4313_s14, %s3624_s28  ;;  %s3629_s23 = scalar_lea.hbm %s4835_s10, 8192 }
 0x111   : > { %p3630_p2 = scmp.lt.u32.totalorder %s4313_s14, %s4835_s10  ;;  %p3631_p9 = scmp.lt.u32.totalorder %s3629_s23, %s3624_s28 }
 0x112   : > { %p3627_p13 = pnand %p3625_p1, %p4946_p4  ;;  %p3633_p10 = scmp.lt.u32.totalorder %s3624_s28, %s4313_s14 }
 0x113   : > { %p3632_p7 = por %p3631_p9, %p3630_p2 }
 0x114   : > { %p3628_p6 = pneg %p3627_p13 }
 0x115   : > { %p3634_p8 = por %p3633_p10, %p3632_p7 }
 0x117   : > { %p3635_p12 = pnand %p3634_p8, %p3628_p6 }
 0x119   : > { %3638 = shalt.err (!%p3635_p12)
}
 0x11a   : > { %s3639_s30 = scalar_lea.vmem %s4315_s29, 4096  ;;  %s3813_s18 = smov [#allocation15]  }
 0x11b   : > { %p3640_p0 = scmp.ne.s32.totalorder %s4315_s29, %s3639_s30  ;;  %s3644_s17 = sshll.u32 %s3813_s18, 4  ;;  %s3645_s17 = int_to_ptr.vmem [resolvable:$false] %s3644_s17 }
 0x11c   : > { %s3646_s12 = scalar_lea.vmem %s3645_s17, 8192  ;;  %p3647_p1 = scmp.lt.s32.totalorder %s4315_s29, %s3645_s17 }
 0x11d   : > { %p3642_p3 = pnand %p3640_p0, %p4946_p4  ;;  %p3648_p13 = scmp.lt.s32.totalorder %s3646_s12, %s3639_s30 }
 0x11f   : > { %p3643_p11 = pneg %p3642_p3  ;;  %p3649_p2 = por %p3648_p13, %p3647_p1 }
 0x121   : > { %p3650_p9 = pnand %p3649_p2, %p3643_p11 }
 0x123   : > { %3653 = shalt.err (!%p3650_p9)
}
 0x124   : > { %3062 = dma.hbm_to_vmem [thread:$0]  (!%p4947_p5), %s4313_s14, 4096, %s4315_s29, %s612_s27, %s3811_s4, %s3811_s4, %s3812_s20  }
 0x125   : > { %s4948_s13 = sld [smem:[#allocation37_spill]] }
 0x12b   : > { %p4949_p4 = scmp.ne.s32.totalorder %s4948_s13, 0 }
 0x12c   : > { %s4950_s16 = sld [smem:[#allocation28_spill]] (!%p4949_p4)  ;;  %s4951_s8 = sld [smem:[#allocation34_spill]] (!%p4949_p4) }
 0x12d   : > { %640 = sbr.rel (%p4949_p4) target bundleno = 2673 (0xa71), region = 76 }
 0x132   : > { %s4347_s19 = sand.u32 (!%p4949_p4), 1, %s4950_s16   ;;  %p4952_p6 = scmp.ne.s32.totalorder (!%p4949_p4), %s4951_s8, 0 }
 0x133   : > { %s4882_s7 = sshll.u32 (!%p4949_p4), %s4347_s19, 4  ;;  %s643_s11 = scalar_lea.sflag (!%p4949_p4), [#allocation4], %s4347_s19 }
 0x134   : > { %s4353_s1 = scalar_lea.vmem [#allocation3], %s4882_s7 }
 0x135   : > { %3727 = dma.done.wait (%p4952_p6), %s643_s11, 256  }
 0x136   : > { %3729 = vsyncadd (%p4952_p6), %s643_s11, 4294967040  ;;  %s4953_s24 = sld [smem:[#allocation33_spill]]  ;;  %s2729_s20 = sshll.u32 %s4347_s19, 5 }
 0x137   : > { %s4361_s5 = scalar_lea.vmem [#allocation6], %s2729_s20 }
 0x13c   : > { %s651_s4 = sand.u32 1, %s4953_s24  }
 0x13d   : > { %s652_s14 = scalar_lea.sflag [#allocation7], %s651_s4 }
 0x13e   : > { %3731 = dma.done.wait (%p4952_p6), %s652_s14, 1024  }
 0x13f   : > { %3733 = vsyncadd (%p4952_p6), %s652_s14, 4294966272  ;;  %s4367_s29 = scalar_lea.vmem [#allocation8], %s2729_s20  ;;  %s670_s27 = scalar_lea.sflag [#allocation10], %s651_s4 }
 0x140   : > { %s4369_s28 = scalar_lea.vmem [#allocation9], %s2729_s20 }
 0x141   : > { %3735 = dma.done.wait (%p4952_p6), %s670_s27, 512  }
 0x142   : > { %3737 = vsyncadd (%p4952_p6), %s670_s27, 4294966784  ;;  %p4954_p5 = scmp.eq.s32.totalorder %s4953_s24, 0 }
 0x144   : > { %3739 = dma.done.wait (%p4954_p5), [#allocation10], 1024   ;;  %p4955_p7 = pmov %p4954_p5 }
 0x145   : > { %s4956_s25 = sld [smem:[#allocation25_spill]]  ;;  %s4957_s26 = sld [smem:[#allocation35_spill]] }
 0x146   : > { %3741 = vsyncadd (%p4955_p7), [#allocation10], 4294966272  ;;  %s683_s15 = scalar_lea.sflag [#allocation13], %s651_s4 }
 0x14b   : > { %s684_s23 = sand.u32 1, %s4956_s25   ;;  %p4958_p10 = scmp.ne.s32.totalorder %s4957_s26, 0 }
 0x14c   : > { %s3015_s6 = smul.u32 448, %s684_s23 }
 0x14e   : > { %s4380_s30 = scalar_lea.vmem [#allocation12], %s3015_s6 }
 0x14f   : > { %3743 = dma.done.wait (%p4958_p10), %s683_s15, 8192  }
 0x150   : > { %3745 = vsyncadd (%p4958_p10), %s683_s15, 4294959104  ;;  %s2733_s18 = sshll.u32 %s684_s23, 6  ;;  %s2734_s17 = sshll.u32 %s684_s23, 8 }
 0x151   : > { %s4386_s12 = scalar_lea.vmem [#allocation14], %s2733_s18  ;;  %s701_s13 = scalar_lea.sflag [#allocation16], %s684_s23 }
 0x152   : > { %s4388_s16 = scalar_lea.vmem [#allocation15], %s2734_s17 }
 0x153   : > { %3747 = dma.done.wait (%p4958_p10), %s701_s13, 4096  }
 0x154   : > { %3749 = vsyncadd (%p4958_p10), %s701_s13, 4294963200  ;;  %s4959_s8 = sld [smem:[#allocation30_spill]]  ;;  %s4960_s20 = sld [smem:[#allocation48_spill]] }
 0x155   : > { %s4961_s23 = sld [smem:[#allocation49_spill]]  ;;  %s4962_s17 = sld [smem:[#allocation53_spill]] }
 0x156   : > { %s4963_s2 = sld [smem:[#allocation51_spill]]  ;;  %s4964_s9 = sshll.u32 %s4347_s19, 4 }
 0x157   : > { %s4418_s24 = scalar_lea.vmem [#allocation17], %s4964_s9 }
 0x15a   : > { %p792_p8 = scmp.lt.s32.totalorder %s4959_s8, 1  ;;  %p2736_p12 = scmp.ne.s32.totalorder %s4959_s8, 0 }
 0x15b   : > { %v810_v0 = vld [vmem:[%s4353_s1] sm:$0xff] (!%p2736_p12)  ;;  %v811_v1 = vld [vmem:[%s4353_s1 + $0x8] sm:$0xff] (!%p2736_p12) }
 0x15c   : > { %s4396_s11 = scalar_select %p792_p8, %s4959_s8, 1 }
 0x15d   : > { %809 = sbr.rel (%p2736_p12) target bundleno = 356 (0x164), region = 112  ;;  %812 = vst [vmem:[#allocation2] sm:$0xff] (!%p2736_p12), %v810_v0  ;;  %813 = vst [vmem:[#allocation2 + $0x8] sm:$0xff] (!%p2736_p12), %v811_v1 }
 0x15e   : > { %s794_s14 = scalar_lea.vmem %s4960_s20, %s4396_s11  ;;  %s797_s6 = scalar_lea.vmem %s4961_s23, %s4396_s11 }
 0x15f   : > { %s3016_s26 = smul.u32 7, %s4396_s11  ;;  %s804_s13 = scalar_lea.vmem %s4962_s17, %s4396_s11 }
 0x161   : > { %s4414_s3 = scalar_lea.vmem %s4963_s2, %s3016_s26 }
 0x164 PF: > { %v814_v2 = vld [vmem:[#allocation2] sm:$0xff]  ;;  %v815_v3 = vld [vmem:[#allocation2 + $0x8] sm:$0xff]  ;;  %v3238_v4 = vld [vmem:[%s4380_s30 + $0x4] ss:$28 sps:$4 sm:$0xff]   ;;  %v3814_v45 = vmov 0   ;;  %v3815_v46 = vmov 0.0  }
 0x165   : > { %816 = vadd.xlane.f32.xlu0 %v814_v2  ;;  %v3240_v5 = vld [vmem:[%s4380_s30 + $0xc] ss:$28 sps:$4 sm:$0xff]   ;;  %v3242_v6 = vld [vmem:[%s4380_s30] ss:$28 sps:$4 sm:$0xff]   ;;  %1247 = vmatprep.subr.bf16.mxu0 %v3238_v4  ;;  %v3248_v10 = vld [vmem:[%s4380_s30 + $0x38] ss:$28 sps:$4 sm:$0xff]  }
 0x166   : > { %v3243_v7 = vld [vmem:[%s4380_s30 + $0x8] ss:$28 sps:$4 sm:$0xff]   ;;  %v3244_v8 = vld [vmem:[%s4380_s30 + $0x3c] ss:$28 sps:$4 sm:$0xff]   ;;  %1290 = vmatprep.subr.bf16.mxu1 %v3240_v5  ;;  %1248 = vmatpush1.bf16.msra.mxu0 %v3242_v6  ;;  %v3250_v20 = vld [vmem:[%s4380_s30 + $0x74] ss:$28 sps:$4 sm:$0xff]  }
 0x167   : > { %v3246_v9 = vld [vmem:[%s4380_s30 + $0x44] ss:$28 sps:$4 sm:$0xff]   ;;  %1291 = vmatpush1.bf16.msra.mxu1 %v3243_v7  ;;  %1249 = vmatprep.subr.bf16.mxu0 %v3244_v8  ;;  %v3252_v21 = vld [vmem:[%s4380_s30 + $0x7c] ss:$28 sps:$4 sm:$0xff]   ;;  %v3254_v22 = vld [vmem:[%s4380_s30 + $0x70] ss:$28 sps:$4 sm:$0xff]  }
 0x168   : > { %v3249_v11 = vld [vmem:[%s4380_s30 + $0x40] ss:$28 sps:$4 sm:$0xff]   ;;  %1292 = vmatprep.subr.bf16.mxu1 %v3246_v9  ;;  %v3255_v23 = vld [vmem:[%s4380_s30 + $0x78] ss:$28 sps:$4 sm:$0xff]   ;;  %v3256_v24 = vld [vmem:[%s4380_s30 + $0xac] ss:$28 sps:$4 sm:$0xff]   ;;  %1279 = vmatprep.mubr.bf16.mxu0 %v3814_v45 }
 0x169   : > { %818 = vadd.xlane.f32.xlu0 %v815_v3  ;;  %v3258_v25 = vld [vmem:[%s4380_s30 + $0xb4] ss:$28 sps:$4 sm:$0xff]   ;;  %v3260_v26 = vld [vmem:[%s4380_s30 + $0xa8] ss:$28 sps:$4 sm:$0xff]   ;;  %v3266_v30 = vld [vmem:[%s4380_s30 + $0xe0] ss:$28 sps:$4 sm:$0xff]   ;;  %1322 = vmatprep.mubr.bf16.mxu1 %v3814_v45 }
 0x16a   : > { %1250 = vmatpush1.bf16.msra.mxu0 %v3248_v10  ;;  %v3261_v27 = vld [vmem:[%s4380_s30 + $0xb0] ss:$28 sps:$4 sm:$0xff]   ;;  %v3262_v28 = vld [vmem:[%s4380_s30 + $0xe4] ss:$28 sps:$4 sm:$0xff]   ;;  %v3268_v32 = vld [vmem:[%s4380_s30 + $0x11c] ss:$28 sps:$4 sm:$0xff]  }
 0x16b   : > { %1293 = vmatpush1.bf16.msra.mxu1 %v3249_v11  ;;  %1251 = vmatprep.subr.bf16.mxu0 %v3250_v20  ;;  %v3264_v29 = vld [vmem:[%s4380_s30 + $0xec] ss:$28 sps:$4 sm:$0xff]   ;;  %v3270_v33 = vld [vmem:[%s4380_s30 + $0x124] ss:$28 sps:$4 sm:$0xff]   ;;  %v3272_v34 = vld [vmem:[%s4380_s30 + $0x118] ss:$28 sps:$4 sm:$0xff]  }
 0x16c   : > { %1294 = vmatprep.subr.bf16.mxu1 %v3252_v21  ;;  %v3267_v31 = vld [vmem:[%s4380_s30 + $0xe8] ss:$28 sps:$4 sm:$0xff]   ;;  %v3273_v35 = vld [vmem:[%s4380_s30 + $0x120] ss:$28 sps:$4 sm:$0xff]   ;;  %v3274_v36 = vld [vmem:[%s4380_s30 + $0x154] ss:$28 sps:$4 sm:$0xff]  }
 0x16d   : > { %v3276_v37 = vld [vmem:[%s4380_s30 + $0x15c] ss:$28 sps:$4 sm:$0xff]   ;;  %v3278_v38 = vld [vmem:[%s4380_s30 + $0x150] ss:$28 sps:$4 sm:$0xff]   ;;  %v3284_v42 = vld [vmem:[%s4380_s30 + $0x188] ss:$28 sps:$4 sm:$0xff]  }
 0x16e   : > { %1252 = vmatpush1.bf16.msra.mxu0 %v3254_v22  ;;  %v3279_v39 = vld [vmem:[%s4380_s30 + $0x158] ss:$28 sps:$4 sm:$0xff]   ;;  %v3280_v40 = vld [vmem:[%s4380_s30 + $0x18c] ss:$28 sps:$4 sm:$0xff]   ;;  %v2737_v55 = vld [vmem:[%s794_s14] ss:$0 sm:$0xff] }
 0x16f   : > { %1295 = vmatpush1.bf16.msra.mxu1 %v3255_v23  ;;  %1253 = vmatprep.subr.bf16.mxu0 %v3256_v24  ;;  %v3282_v41 = vld [vmem:[%s4380_s30 + $0x194] ss:$28 sps:$4 sm:$0xff]   ;;  %v3296_v5 = vld [vmem:[%s4380_s30 + $0x84] ss:$28 sps:$4 sm:$0xff]   ;;  %vm3816_vm0 = vmmov 0   ;;  %v924_v23 = vlaneseq  ;;  %vm1557_vm3 = vcmask 261120  }
 0x170   : > { %1296 = vmatprep.subr.bf16.mxu1 %v3258_v25  ;;  %v3285_v43 = vld [vmem:[%s4380_s30 + $0x190] ss:$28 sps:$4 sm:$0xff]   ;;  %v3289_v0 = vld [vmem:[%s4380_s30 + $0x18] ss:$28 sps:$4 sm:$0xff]   ;;  %v3294_v6 = vld [vmem:[%s4380_s30 + $0x80] ss:$28 sps:$4 sm:$0xff]  }
 0x171   : > { %v3288_v44 = vld [vmem:[%s4380_s30 + $0x14] ss:$28 sps:$4 sm:$0xff]   ;;  %v3297_v7 = vld [vmem:[%s4380_s30 + $0x88] ss:$28 sps:$4 sm:$0xff]   ;;  %v3300_v8 = vld [vmem:[%s4380_s30 + $0xbc] ss:$28 sps:$4 sm:$0xff]  }
 0x172   : > { %1254 = vmatpush1.bf16.msra.mxu0 %v3260_v26  ;;  %v2738_v59 = vld [vmem:[%s797_s6] ss:$0 sm:$0xff]  ;;  %v3298_v9 = vld [vmem:[%s4380_s30 + $0xb8] ss:$28 sps:$4 sm:$0xff]   ;;  %v3301_v10 = vld [vmem:[%s4380_s30 + $0xc0] ss:$28 sps:$4 sm:$0xff]  }
 0x173   : > { %1297 = vmatpush1.bf16.msra.mxu1 %v3261_v27  ;;  %1255 = vmatprep.subr.bf16.mxu0 %v3262_v28  ;;  %v3286_v63 = vld [vmem:[%s4380_s30 + $0x10] ss:$28 sps:$4 sm:$0xff]   ;;  %v3316_v20 = vld [vmem:[%s4380_s30 + $0x19c] ss:$28 sps:$4 sm:$0xff]   ;;  %v4510_v24 = vshrl.u32 %v924_v23, 7  ;;  %vm1647_vm4 = vcmask 523264  }
 0x174   : > { %1298 = vmatprep.subr.bf16.mxu1 %v3264_v29  ;;  %v3293_v4 = vld [vmem:[%s4380_s30 + $0x50] ss:$28 sps:$4 sm:$0xff]   ;;  %v3314_v21 = vld [vmem:[%s4380_s30 + $0x198] ss:$28 sps:$4 sm:$0xff]   ;;  %v3317_v22 = vld [vmem:[%s4380_s30 + $0x1a0] ss:$28 sps:$4 sm:$0xff]  }
 0x175   : > { %v3304_v11 = vld [vmem:[%s4380_s30 + $0xf4] ss:$28 sps:$4 sm:$0xff]   ;;  %v926_v25 = vsub.s32 0, %v4510_v24  ;;  %v930_v27 = vsub.s32 1, %v4510_v24  ;;  %v938_v28 = vsub.s32 3, %v4510_v24  ;;  %v934_v29 = vsub.s32 2, %v4510_v24 }
 0x176   : > { %1256 = vmatpush1.bf16.msra.mxu0 %v3266_v30  ;;  %v922_v26 = vld [vmem:[%s4414_s3] sm:$0xff]  ;;  %s3817_s3 = smov 127   ;;  %vm1845_vm5 = vcmask 785408  }
 0x177   : > { %1299 = vmatpush1.bf16.msra.mxu1 %v3267_v31  ;;  %1257 = vmatprep.subr.bf16.mxu0 %v3268_v32  ;;  %v927_v30 = vrot.slane %v922_v26, %v926_v25  ;;  %v931_v31 = vrot.slane %v922_v26, %v930_v27  ;;  %v939_v32 = vrot.slane %v922_v26, %v938_v28 }
 0x178   : > { %1300 = vmatprep.subr.bf16.mxu1 %v3270_v33  ;;  %v935_v33 = vrot.slane %v922_v26, %v934_v29 }
 0x17a   : > { %1258 = vmatpush1.bf16.msra.mxu0 %v3272_v34 }
 0x17b   : > { %1301 = vmatpush1.bf16.msra.mxu1 %v3273_v35  ;;  %1259 = vmatprep.subr.bf16.mxu0 %v3274_v36 }
 0x17c   : > { %1302 = vmatprep.subr.bf16.mxu1 %v3276_v37 }
 0x17e   : > { %1260 = vmatpush1.bf16.msra.mxu0 %v3278_v38 }
 0x17f   : > { %1303 = vmatpush1.bf16.msra.mxu1 %v3279_v39  ;;  %1261 = vmatprep.subr.bf16.mxu0 %v3280_v40 }
 0x180   : > { %1304 = vmatprep.subr.bf16.mxu1 %v3282_v41 }
 0x182   : > { %1262 = vmatpush1.bf16.msra.mxu0 %v3284_v42 }
 0x183   : > { %1305 = vmatpush1.bf16.msra.mxu1 %v3285_v43  ;;  %1333 = vmatprep.subr.bf16.mxu0 %v3288_v44 }
 0x184   : > { %2937 = vmatprep.subr.bf16.mxu1 %v3815_v46 }
 0x1f2   : > { %v817_v12 = vpop.xlane.xlu0 %816 }
 0x1f3   : > { %v821_v13 = vmul.f32 0.0078125, %v817_v12  ;;  %v3302_v12 = vld [vmem:[%s4380_s30 + $0xf0] ss:$28 sps:$4 sm:$0xff]  }
 0x1f5   : > { %v4431_v14 = vsub.f32 %v814_v2, %v821_v13  ;;  %v3292_v2 = vld [vmem:[%s4380_s30 + $0x4c] ss:$28 sps:$4 sm:$0xff]   ;;  %v3305_v13 = vld [vmem:[%s4380_s30 + $0xf8] ss:$28 sps:$4 sm:$0xff]  }
 0x1f6   : > { %v819_v15 = vpop.xlane.xlu0 %818 }
 0x1f7   : > { %v822_v16 = vmul.f32 0.0078125, %v819_v15  ;;  %v825_v17 = vmul.f32 %v4431_v14, %v4431_v14  ;;  %v3306_v15 = vld [vmem:[%s4380_s30 + $0x128] ss:$28 sps:$4 sm:$0xff]  }
 0x1f9   : > { %v4435_v18 = vsub.f32 %v815_v3, %v822_v16  ;;  %827 = vadd.xlane.f32.xlu1 %v825_v17  ;;  %v3290_v3 = vld [vmem:[%s4380_s30 + $0x48] ss:$28 sps:$4 sm:$0xff]   ;;  %v3309_v16 = vld [vmem:[%s4380_s30 + $0x130] ss:$28 sps:$4 sm:$0xff]  }
 0x1fa   : > { %v3312_v17 = vld [vmem:[%s4380_s30 + $0x164] ss:$28 sps:$4 sm:$0xff]  }
 0x1fb   : > { %v826_v19 = vmul.f32 %v4435_v18, %v4435_v18 }
 0x1fd   : > { %829 = vadd.xlane.f32.xlu1 %v826_v19  ;;  %v3313_v19 = vld [vmem:[%s4380_s30 + $0x168] ss:$28 sps:$4 sm:$0xff]  }
 0x286   : > { %v828_v47 = vpop.xlane.xlu1 %827 }
 0x287   : > { %v831_v48 = vmul.f32 0.0078125, %v828_v47 }
 0x289   : > { %v833_v49 = vadd.f32 1e-05, %v831_v48 }
 0x28a   : > { %v830_v50 = vpop.xlane.xlu1 %829 }
 0x28b   : > { %3358 = vrsqrt.f32 %v833_v49  ;;  %v832_v51 = vmul.f32 0.0078125, %v830_v50 }
 0x28d   : > { %v834_v52 = vadd.f32 1e-05, %v832_v51 }
 0x28f   : > { %3360 = vrsqrt.f32 %v834_v52 }
 0x295   : > { %v3359_v53 = vpop.eup %3358 }
 0x296   : > { %v837_v54 = vmul.f32 %v3359_v53, %v4431_v14  ;;  %v3308_v14 = vld [vmem:[%s4380_s30 + $0x12c] ss:$28 sps:$4 sm:$0xff]  }
 0x298   : > { %v846_v58 = vmul.f32 %v2737_v55, %v837_v54 }
 0x299   : > { %v3361_v56 = vpop.eup %3360 }
 0x29a   : > { %v838_v57 = vmul.f32 %v3361_v56, %v4435_v18  ;;  %v855_v61 = vadd.f32 %v2738_v59, %v846_v58  ;;  %v3310_v18 = vld [vmem:[%s4380_s30 + $0x160] ss:$28 sps:$4 sm:$0xff]   ;;  %s3818_s30 = smov 1  }
 0x29c   : > { %v847_v60 = vmul.f32 %v2737_v55, %v838_v57 }
 0x29e   : > { %v856_v62 = vadd.f32 %v2738_v59, %v847_v60 }
 0x2a0   : > { %v857_v1 = vpack.c.bf16 %v856_v62, %v855_v61 }
 0x2a2   : > { %1280 = vmatmul.mubr.bf16.vlgmr.msra.gmra.mrb[0].mxu0 %v857_v1  ;;  %1323 = vmatmul.mubr.bf16.vlgmr.msra.gmra.mrb[0].mxu1 %v857_v1 }
 0x2a3   : > { %1334 = vmatpush1.bf16.msra.mxu0 %v3286_v63  ;;  %2938 = vmatpush3.bf16.msra.mxu1 %v3289_v0  ;;  %v942_v0 = vsub.s32 4, %v4510_v24 }
 0x2a4   : > { %1335 = vmatprep.subr.bf16.mxu0 %v3292_v2  ;;  %2939 = vmatprep.subr.bf16.mxu1 %v3815_v46  ;;  %v946_v2 = vsub.s32 5, %v4510_v24 }
 0x2a5   : > { %1365 = vmatprep.mubr.bf16.mxu0 %v3814_v45  ;;  %2953 = vmatprep.mubr.msk.bf16.mxu1 %vm3816_vm0, %v3815_v46 }
 0x2a7   : > { %1336 = vmatpush1.bf16.msra.mxu0 %v3290_v3  ;;  %2940 = vmatpush3.bf16.msra.mxu1 %v3293_v4 }
 0x2a8   : > { %1337 = vmatprep.subr.bf16.mxu0 %v3296_v5  ;;  %2941 = vmatprep.subr.bf16.mxu1 %v3815_v46 }
 0x2ab   : > { %1338 = vmatpush1.bf16.msra.mxu0 %v3294_v6  ;;  %2942 = vmatpush3.bf16.msra.mxu1 %v3297_v7 }
 0x2ac   : > { %1339 = vmatprep.subr.bf16.mxu0 %v3300_v8  ;;  %2943 = vmatprep.subr.bf16.mxu1 %v3815_v46  ;;  %v943_v8 = vrot.slane %v922_v26, %v942_v0 }
 0x2af   : > { %1340 = vmatpush1.bf16.msra.mxu0 %v3298_v9  ;;  %2944 = vmatpush3.bf16.msra.mxu1 %v3301_v10  ;;  %v947_v10 = vrot.slane %v922_v26, %v946_v2 }
 0x2b0   : > { %1341 = vmatprep.subr.bf16.mxu0 %v3304_v11  ;;  %2945 = vmatprep.subr.bf16.mxu1 %v3815_v46 }
 0x2b3   : > { %1342 = vmatpush1.bf16.msra.mxu0 %v3302_v12  ;;  %2946 = vmatpush3.bf16.msra.mxu1 %v3305_v13 }
 0x2b4   : > { %1343 = vmatprep.subr.bf16.mxu0 %v3308_v14  ;;  %2947 = vmatprep.subr.bf16.mxu1 %v3815_v46 }
 0x2b7   : > { %1344 = vmatpush1.bf16.msra.mxu0 %v3306_v15  ;;  %2948 = vmatpush3.bf16.msra.mxu1 %v3309_v16 }
 0x2b8   : > { %1345 = vmatprep.subr.bf16.mxu0 %v3312_v17  ;;  %2949 = vmatprep.subr.bf16.mxu1 %v3815_v46 }
 0x2bb   : > { %1346 = vmatpush1.bf16.msra.mxu0 %v3310_v18  ;;  %2950 = vmatpush3.bf16.msra.mxu1 %v3313_v19 }
 0x2bc   : > { %1347 = vmatprep.subr.bf16.mxu0 %v3316_v20  ;;  %2951 = vmatprep.subr.bf16.mxu1 %v3815_v46 }
 0x2bf   : > { %1348 = vmatpush1.bf16.msra.mxu0 %v3314_v21  ;;  %2952 = vmatpush3.bf16.msra.mxu1 %v3317_v22 }
 0x2c2   : > { %1366 = vmatmul.mubr.bf16.vlgmr.msra.gmra.mrb[4].mxu0 %v857_v1  ;;  %2954 = vmatmul.mubr.bf16.vlgmr.msra.gmra.mrb[4].mxu1 %v857_v1  ;;  %v950_v1 = vsub.s32 6, %v4510_v24 }
 0x2c4   : > { %v951_v9 = vrot.slane %v922_v26, %v950_v1 }
 0x375   : > { %v1281_v34 = vpop.f32.mrb[0].mxu0  ;;  %v1324_v35 = vpop.f32.mrb[0].mxu1 }
 0x376   : > { %v4517_v36 = vadd.f32 %v1281_v34, %v927_v30  ;;  %v1283_v37 = vpop.f32.mrb[1].mxu0  ;;  %v1326_v38 = vpop.f32.mrb[1].mxu1  ;;  %v1325_v43 = vadd.f32 %v1324_v35, %v935_v33 }
 0x377   : > { %v4519_v39 = vadd.f32 %v1283_v37, %v931_v31  ;;  %v1327_v40 = vadd.f32 %v1326_v38, %v939_v32  ;;  %v1285_v41 = vpop.f32.mrb[2].mxu0  ;;  %v1328_v42 = vpop.f32.mrb[2].mxu1 }
 0x378   : > { %v1329_v44 = vadd.f32 %v1328_v42, %v935_v33  ;;  %v1287_v45 = vpop.f32.mrb[3].mxu0  ;;  %v1330_v47 = vpop.f32.mrb[3].mxu1  ;;  %1425 = vrot.lane.b32.xlu0 %v4517_v36, %s3817_s3  ;;  %v4525_v53 = vadd.f32 %v1285_v41, %v927_v30 }
 0x379   : > { %v1873_v48 = vmul.f32 0.044715, %v1327_v40  ;;  %1429 = vrot.lane.b32.xlu1 %v4519_v39, %s3817_s3  ;;  %v1331_v49 = vadd.f32 %v1330_v47, %v939_v32  ;;  %v4531_v61 = vadd.f32 %v1287_v45, %v931_v31  ;;  %v1865_v5 = vmul.f32 0.5, %v1327_v40 }
 0x37a   : > { %v1545_v50 = vpack.c.bf16 %v1329_v44, %v1325_v43  ;;  %v4523_v51 = vpack.i.bf16 %v1329_v44, %v1325_v43 }
 0x37b   : > { %v1881_v52 = vmul.f32 %v1873_v48, %v1327_v40  ;;  %v1877_v54 = vmul.f32 0.044715, %v1331_v49  ;;  %v1869_v6 = vmul.f32 0.5, %v1331_v49 }
 0x37c   : > { %2973 = vmatprep.subr.bf16.mxu1 %v1545_v50  ;;  %1452 = vrot.lane.b32.xlu0 %v4517_v36, %s3818_s30 }
 0x37d   : > { %v1889_v55 = vmul.f32 %v1881_v52, %v1327_v40  ;;  %2974 = vmatpush3.bf16.msra.mxu1 %v1545_v50  ;;  %1427 = vrot.lane.b32.xlu1 %v4525_v53, %s3817_s3  ;;  %v1885_v56 = vmul.f32 %v1877_v54, %v1331_v49 }
 0x37f   : > { %v1897_v57 = vadd.f32 %v1889_v55, %v1327_v40  ;;  %v1893_v58 = vmul.f32 %v1885_v56, %v1331_v49 }
 0x380   : > { %1456 = vrot.lane.b32.xlu0 %v4519_v39, %s3818_s30 }
 0x381   : > { %v1905_v59 = vmul.f32 0.7978846, %v1897_v57  ;;  %1454 = vrot.lane.b32.xlu1 %v4525_v53, %s3818_s30  ;;  %v1901_v60 = vadd.f32 %v1893_v58, %v1331_v49 }
 0x383   : > { %3362 = vtanh.f32 %v1905_v59  ;;  %v1909_v62 = vmul.f32 0.7978846, %v1901_v60 }
 0x385   : > { %1431 = vrot.lane.b32.xlu1 %v4531_v61, %s3817_s3  ;;  %3364 = vtanh.f32 %v1909_v62 }
 0x389   : > { %1458 = vrot.lane.b32.xlu1 %v4531_v61, %s3818_s30 }
 0x38d   : > { %v3363_v63 = vpop.eup %3362 }
 0x38e   : > { %v1921_v3 = vadd.f32 1.0, %v3363_v63 }
 0x38f   : > { %v3365_v4 = vpop.eup %3364 }
 0x390   : > { %v1925_v7 = vadd.f32 1.0, %v3365_v4  ;;  %v4538_v11 = vmul.f32 %v1921_v3, %v1865_v5 }
 0x392   : > { %v4540_v12 = vmul.f32 %v1925_v7, %v1869_v6 }
 0x394   : > { %v1937_v15 = vpack.c.bf16 %v4540_v12, %v4538_v11  ;;  %v3354_v11 = vld [vmem:[%s4386_s12 + $0x20] sm:$0xff]   ;;  %v3355_v12 = vld [vmem:[%s4386_s12 + $0x28] sm:$0xff]  }
 0x395   : > { %v1367_v13 = vpop.f32.mrb[4].mxu0  ;;  %v1410_v14 = vpop.f32.mrb[4].mxu1 }
 0x396   : > { %v4544_v16 = vadd.f32 %v1367_v13, %v943_v8  ;;  %v1411_v17 = vadd.f32 %v1410_v14, %v951_v9  ;;  %v1369_v18 = vpop.f32.mrb[5].mxu0  ;;  %v2955_v19 = vpop.f32.mrb[5].mxu1 }
 0x397   : > { %v1370_v20 = vadd.f32 %v1369_v18, %v947_v10  ;;  %v1371_v21 = vpop.f32.mrb[6].mxu0  ;;  %v1413_v22 = vpop.f32.mrb[6].mxu1 }
 0x398   : > { %v1874_v24 = vmul.f32 0.044715, %v4544_v16  ;;  %v1876_v25 = vmul.f32 0.044715, %v1411_v17  ;;  %v1372_v26 = vadd.f32 %v1371_v21, %v943_v8  ;;  %v1414_v27 = vadd.f32 %v1413_v22, %v951_v9  ;;  %v1373_v28 = vpop.f32.mrb[7].mxu0  ;;  %v2956_v29 = vpop.f32.mrb[7].mxu1 }
 0x399   : > { %v1875_v30 = vmul.f32 0.044715, %v1370_v20  ;;  %v1374_v31 = vadd.f32 %v1373_v28, %v947_v10  ;;  %v1868_v7 = vmul.f32 0.5, %v1411_v17  ;;  %v1867_v13 = vmul.f32 0.5, %v1370_v20 }
 0x39a   : > { %v1882_v32 = vmul.f32 %v1874_v24, %v4544_v16  ;;  %v1884_v33 = vmul.f32 %v1876_v25, %v1411_v17  ;;  %v1878_v34 = vmul.f32 0.044715, %v1372_v26  ;;  %v1880_v35 = vmul.f32 0.044715, %v1414_v27 }
 0x39b   : > { %v1883_v37 = vmul.f32 %v1875_v30, %v1370_v20  ;;  %v1879_v38 = vmul.f32 0.044715, %v1374_v31  ;;  %v1872_v8 = vmul.f32 0.5, %v1414_v27  ;;  %v1871_v14 = vmul.f32 0.5, %v1374_v31 }
 0x39c   : > { %v1890_v40 = vmul.f32 %v1882_v32, %v4544_v16  ;;  %v1892_v41 = vmul.f32 %v1884_v33, %v1411_v17  ;;  %v1886_v42 = vmul.f32 %v1878_v34, %v1372_v26  ;;  %v1888_v43 = vmul.f32 %v1880_v35, %v1414_v27 }
 0x39d   : > { %v1891_v44 = vmul.f32 %v1883_v37, %v1370_v20  ;;  %v1887_v45 = vmul.f32 %v1879_v38, %v1374_v31  ;;  %v1866_v24 = vmul.f32 0.5, %v4544_v16  ;;  %v1434_v34 = vand.u32 127, %v924_v23  ;;  %v1419_v23 = vld [vmem:[%s4361_s5 + $0x10] sm:$0xff] }
 0x39e   : > { %v1894_v47 = vmul.f32 %v1886_v42, %v1372_v26  ;;  %v1896_v48 = vmul.f32 %v1888_v43, %v1414_v27  ;;  %v1900_v49 = vadd.f32 %v1892_v41, %v1411_v17  ;;  %v1898_v50 = vadd.f32 %v1890_v40, %v4544_v16  ;;  %v1440_v40 = vld [vmem:[%s4367_s29] sm:$0xff]  ;;  %v1441_v41 = vld [vmem:[%s4367_s29 + $0x8] sm:$0xff] }
 0x39f   : > { %v1899_v52 = vadd.f32 %v1891_v44, %v1370_v20  ;;  %v1895_v54 = vmul.f32 %v1887_v45, %v1374_v31  ;;  %v1870_v17 = vmul.f32 0.5, %v1372_v26  ;;  %vm1435_vm1 = vcmp.lt.s32.totalorder %v1434_v34, 127  ;;  %v1442_v45 = vld [vmem:[%s4367_s29 + $0x10] sm:$0xff] }
 0x3a0   : > { %v1904_v55 = vadd.f32 %v1896_v48, %v1414_v27  ;;  %v1908_v56 = vmul.f32 0.7978846, %v1900_v49  ;;  %v1902_v57 = vadd.f32 %v1894_v47, %v1372_v26  ;;  %v1906_v62 = vmul.f32 0.7978846, %v1898_v50  ;;  %v1443_v47 = vld [vmem:[%s4367_s29 + $0x18] sm:$0xff]  ;;  %v1417_v48 = vld [vmem:[%s4361_s5] sm:$0xff] }
 0x3a1   : > { %v1907_v58 = vmul.f32 0.7978846, %v1899_v52  ;;  %v1903_v59 = vadd.f32 %v1895_v54, %v1374_v31  ;;  %vm1460_vm2 = vcmp.lt.s32.totalorder %v1434_v34, 1  ;;  %v1418_v49 = vld [vmem:[%s4361_s5 + $0x8] sm:$0xff]  ;;  %s3820_s29 = smov 96  }
 0x3a2   : > { %v1912_v60 = vmul.f32 0.7978846, %v1904_v55  ;;  %3366 = vtanh.f32 %v1908_v56  ;;  %v1910_v0 = vmul.f32 0.7978846, %v1902_v57  ;;  %v1420_v55 = vld [vmem:[%s4361_s5 + $0x18] sm:$0xff]  ;;  %v1465_v56 = vld [vmem:[%s4369_s28] sm:$0xff] }
 0x3a3   : > { %3368 = vtanh.f32 %v1907_v58  ;;  %v1911_v63 = vmul.f32 0.7978846, %v1903_v59  ;;  %v1466_v57 = vld [vmem:[%s4369_s28 + $0x8] sm:$0xff]  ;;  %s3819_s5 = smov 64  }
 0x3a4   : > { %3370 = vtanh.f32 %v1912_v60 }
 0x3a5   : > { %3372 = vtanh.f32 %v1911_v63 }
 0x3a6   : > { %3374 = vtanh.f32 %v1906_v62 }
 0x3a7   : > { %3376 = vtanh.f32 %v1910_v0 }
 0x3ac   : > { %v3367_v1 = vpop.eup %3366 }
 0x3ad   : > { %v3369_v2 = vpop.eup %3368  ;;  %v1924_v3 = vadd.f32 1.0, %v3367_v1  ;;  %v1421_v1 = vmul.f32 %v1417_v48, %v4517_v36 }
 0x3ae   : > { %v3371_v4 = vpop.eup %3370  ;;  %v1923_v5 = vadd.f32 1.0, %v3369_v2  ;;  %v1422_v2 = vmul.f32 %v1418_v49, %v4519_v39 }
 0x3af   : > { %v3373_v6 = vpop.eup %3372  ;;  %v1928_v9 = vadd.f32 1.0, %v3371_v4  ;;  %v4550_v21 = vmul.f32 %v1924_v3, %v1868_v7  ;;  %v1467_v3 = vld [vmem:[%s4369_s28 + $0x10] sm:$0xff]  ;;  %v1468_v4 = vld [vmem:[%s4369_s28 + $0x18] sm:$0xff]  ;;  %s3821_s28 = smov 32  }
 0x3b0   : > { %v3375_v10 = vpop.eup %3374  ;;  %v1927_v18 = vadd.f32 1.0, %v3373_v6  ;;  %v4555_v28 = vmul.f32 %v1923_v5, %v1867_v13  ;;  %v1423_v5 = vmul.f32 %v1419_v23, %v4525_v53  ;;  %v1424_v6 = vmul.f32 %v1420_v55, %v4531_v61 }
 0x3b1   : > { %v3377_v19 = vpop.eup %3376  ;;  %v4552_v22 = vmul.f32 %v1928_v9, %v1872_v8  ;;  %v1922_v25 = vadd.f32 1.0, %v3375_v10 }
 0x3b2   : > { %v4557_v29 = vmul.f32 %v1927_v18, %v1871_v14  ;;  %v1926_v27 = vadd.f32 1.0, %v3377_v19 }
 0x3b3   : > { %v1940_v20 = vpack.c.bf16 %v4552_v22, %v4550_v21  ;;  %v4563_v31 = vmul.f32 %v1922_v25, %v1866_v24  ;;  %v3333_v21 = vld [vmem:[%s4388_s16 + $0xb8] sm:$0xff]   ;;  %v1549_v22 = vld [vmem:[#allocation11] sm:$0xff] }
 0x3b4   : > { %v1939_v30 = vpack.c.bf16 %v4557_v29, %v4555_v28  ;;  %v4565_v32 = vmul.f32 %v1926_v27, %v1870_v17 }
 0x3b6   : > { %v1938_v16 = vpack.c.bf16 %v4565_v32, %v4563_v31  ;;  %v3348_v31 = vld [vmem:[%s4388_s16 + $0x78] sm:$0xff]  }
 0x3b7   : > { %v3349_v32 = vld [vmem:[%s4388_s16 + $0x38] sm:$0xff]  }
 0x3ea   : > { %v1426_v33 = vpop.permute.xlu0 %1425 }
 0x3eb   : > { %v1430_v26 = vpop.permute.xlu1 %1429 }
 0x3ec   : > { %v1436_v42 = vsel %vm1435_vm1, %v1426_v33, %v1430_v26  ;;  %v1438_v43 = vsel %vm1435_vm1, %v1430_v26, %v1426_v33 }
 0x3ed   : > { %v1444_v50 = vmul.f32 %v1440_v40, %v1436_v42  ;;  %v1445_v52 = vmul.f32 %v1441_v41, %v1438_v43 }
 0x3ee   : > { %v1453_v35 = vpop.permute.xlu0 %1452 }
 0x3ef   : > { %v1428_v37 = vpop.permute.xlu1 %1427  ;;  %v1448_v10 = vadd.f32 %v1444_v50, %v1421_v1  ;;  %v1449_v13 = vadd.f32 %v1445_v52, %v1422_v2  ;;  %v3320_v1 = vld [vmem:[%s4388_s16 + $0xc8] sm:$0xff]  }
 0x3f2   : > { %v1457_v44 = vpop.permute.xlu0 %1456 }
 0x3f3   : > { %v1455_v38 = vpop.permute.xlu1 %1454  ;;  %v1461_v58 = vsel %vm1460_vm2, %v1453_v35, %v1457_v44  ;;  %v1463_v59 = vsel %vm1460_vm2, %v1457_v44, %v1453_v35 }
 0x3f4   : > { %v1469_v7 = vmul.f32 %v1465_v56, %v1463_v59  ;;  %v1470_v8 = vmul.f32 %v1466_v57, %v1461_v58 }
 0x3f6   : > { %v1473_v39 = vadd.f32 %v1469_v7, %v1448_v10  ;;  %v1474_v17 = vadd.f32 %v1470_v8, %v1449_v13  ;;  %v3322_v7 = vld [vmem:[%s4388_s16 + $0xd0] sm:$0xff]   ;;  %v3324_v10 = vld [vmem:[%s4388_s16 + $0xd8] sm:$0xff]  }
 0x3f7   : > { %v1432_v54 = vpop.permute.xlu1 %1431  ;;  %v3323_v8 = vld [vmem:[%s4388_s16 + $0x90] sm:$0xff]   ;;  %v3325_v13 = vld [vmem:[%s4388_s16 + $0x98] sm:$0xff]  }
 0x3f8   : > { %v1437_v60 = vsel %vm1435_vm1, %v1428_v37, %v1432_v54  ;;  %v1439_v62 = vsel %vm1435_vm1, %v1432_v54, %v1428_v37  ;;  %v3318_v54 = vld [vmem:[%s4388_s16 + $0xc0] sm:$0xff]  }
 0x3f9   : > { %v1446_v63 = vmul.f32 %v1442_v45, %v1437_v60  ;;  %v1447_v0 = vmul.f32 %v1443_v47, %v1439_v62 }
 0x3fb   : > { %v1459_v9 = vpop.permute.xlu1 %1458  ;;  %v1450_v19 = vadd.f32 %v1446_v63, %v1423_v5  ;;  %v1451_v24 = vadd.f32 %v1447_v0, %v1424_v6  ;;  %v3319_v63 = vld [vmem:[%s4388_s16 + $0x80] sm:$0xff]  }
 0x3fc   : > { %v1462_v14 = vsel %vm1460_vm2, %v1455_v38, %v1459_v9  ;;  %v1464_v18 = vsel %vm1460_vm2, %v1459_v9, %v1455_v38 }
 0x3fd   : > { %v1471_v36 = vmul.f32 %v1467_v3, %v1464_v18  ;;  %v1472_v25 = vmul.f32 %v1468_v4, %v1462_v14  ;;  %v3321_v4 = vld [vmem:[%s4388_s16 + $0x88] sm:$0xff]   ;;  %v3326_v14 = vld [vmem:[%s4388_s16 + $0xe0] sm:$0xff]  }
 0x3fe   : > { %v3327_v18 = vld [vmem:[%s4388_s16 + $0xa0] sm:$0xff]  }
 0x3ff   : > { %v1475_v27 = vadd.f32 %v1471_v36, %v1450_v19  ;;  %v1476_v33 = vadd.f32 %v1472_v25, %v1451_v24  ;;  %v3328_v19 = vld [vmem:[%s4388_s16 + $0xe8] sm:$0xff]   ;;  %v3330_v36 = vld [vmem:[%s4388_s16 + $0xf0] sm:$0xff]  }
 0x400   : > { %v3329_v24 = vld [vmem:[%s4388_s16 + $0xa8] sm:$0xff]   ;;  %v3331_v25 = vld [vmem:[%s4388_s16 + $0xb0] sm:$0xff]  }
 0x401   : > { %v3183_v53 = vpack.i.bf16 %v1476_v33, %v1474_v17  ;;  %v1521_v61 = vpack.c.bf16 %v1476_v33, %v1474_v17  ;;  %v1497_v26 = vpack.c.bf16 %v1475_v27, %v1473_v39  ;;  %v3193_v35 = vpack.i.bf16 %v1475_v27, %v1473_v39  ;;  %v3332_v39 = vld [vmem:[%s4388_s16 + $0xf8] sm:$0xff]   ;;  %v1551_v17 = vld [vmem:[#allocation11 + $0x10] sm:$0xff]  ;;  %v1550_v33 = vld [vmem:[#allocation11 + $0x8] sm:$0xff] }
 0x403   : > { %3184 = vrot.lane.b32.xlu1 %v3183_v53, %s3819_s5  ;;  %3179 = vrot.lane.b32.xlu0 %v3183_v53, %s3820_s29  ;;  %v1571_v34 = vsel %vm1557_vm3, %v1521_v61, 0 }
 0x404   : > { %3009 = vmatprep.subr.msk.bf16.mxu0 %vm1557_vm3, %v1521_v61  ;;  %2965 = vmatprep.mubr.msk.bf16.mxu0 %vm1557_vm3, %v1497_v26 }
 0x405   : > { %2958 = vmatpush3.bf16.xpose.msra.mxu0 %v1571_v34 }
 0x407   : > { %3189 = vrot.lane.b32.xlu0 %v3183_v53, %s3821_s28  ;;  %3194 = vrot.lane.b32.xlu1 %v3193_v35, %s3820_s29 }
 0x40b   : > { %3199 = vrot.lane.b32.xlu0 %v3193_v35, %s3819_s5  ;;  %3204 = vrot.lane.b32.xlu1 %v3193_v35, %s3821_s28 }
 0x475   : > { %v3185_v37 = vpop.permute.xlu1 %3184  ;;  %v3180_v38 = vpop.permute.xlu0 %3179 }
 0x476   : > { %v3182_v40 = vunpack.i.h.bf16 %v3180_v38  ;;  %v3181_v41 = vunpack.i.l.bf16 %v3180_v38  ;;  %v3187_v42 = vunpack.i.h.bf16 %v3185_v37  ;;  %v3186_v43 = vunpack.i.l.bf16 %v3185_v37  ;;  %v1552_v38 = vld [vmem:[#allocation11 + $0x18] sm:$0xff] }
 0x478   : > { %v1522_v44 = vpack.c.bf16 %v3182_v40, %v3181_v41  ;;  %v1523_v45 = vpack.c.bf16 %v3187_v42, %v3186_v43  ;;  %v1553_v42 = vld [vmem:[#allocation11 + $0x20] sm:$0xff]  ;;  %v1554_v43 = vld [vmem:[#allocation11 + $0x28] sm:$0xff] }
 0x479   : > { %v3190_v48 = vpop.permute.xlu0 %3189  ;;  %v3195_v55 = vpop.permute.xlu1 %3194 }
 0x47a   : > { %3010 = vmatprep.subr.msk.bf16.mxu0 %vm1557_vm3, %v1522_v44  ;;  %v1574_v47 = vsel %vm1557_vm3, %v1522_v44, 0  ;;  %v3192_v49 = vunpack.i.h.bf16 %v3190_v48  ;;  %v3191_v23 = vunpack.i.l.bf16 %v3190_v48  ;;  %v1577_v52 = vsel %vm1557_vm3, %v1523_v45, 0 }
 0x47b   : > { %2960 = vmatpush3.bf16.xpose.msra.mxu0 %v1574_v47  ;;  %v3197_v58 = vunpack.i.h.bf16 %v3195_v55  ;;  %v3196_v59 = vunpack.i.l.bf16 %v3195_v55 }
 0x47c   : > { %3011 = vmatprep.subr.msk.bf16.mxu0 %vm1557_vm3, %v1523_v45  ;;  %v1524_v50 = vpack.c.bf16 %v3192_v49, %v3191_v23  ;;  %v1556_v45 = vld [vmem:[#allocation11 + $0x38] sm:$0xff] }
 0x47d   : > { %v3200_v56 = vpop.permute.xlu0 %3199  ;;  %v1498_v0 = vpack.c.bf16 %v3197_v58, %v3196_v59  ;;  %v3205_v3 = vpop.permute.xlu1 %3204 }
 0x47e   : > { %v1580_v57 = vsel %vm1557_vm3, %v1524_v50, 0  ;;  %v3202_v60 = vunpack.i.h.bf16 %v3200_v56  ;;  %v3201_v62 = vunpack.i.l.bf16 %v3200_v56  ;;  %v3207_v5 = vunpack.i.h.bf16 %v3205_v3 }
 0x47f   : > { %v3206_v6 = vunpack.i.l.bf16 %v3205_v3 }
 0x480   : > { %v1499_v2 = vpack.c.bf16 %v3202_v60, %v3201_v62 }
 0x481   : > { %v1500_v9 = vpack.c.bf16 %v3207_v5, %v3206_v6 }
 0x483   : > { %2962 = vmatpush3.bf16.xpose.msra.mxu0 %v1577_v52 }
 0x484   : > { %3012 = vmatprep.subr.msk.bf16.mxu0 %vm1557_vm3, %v1524_v50  ;;  %v1555_v50 = vld [vmem:[#allocation11 + $0x30] sm:$0xff] }
 0x48b   : > { %2964 = vmatpush3.bf16.xpose.msra.mxu0 %v1580_v57 }
 0x48c   : > { %2906 = vmatprep.subr.bf16.mxu0 %v3318_v54 }
 0x492   : > { %2966 = vmatmul.mubr.msk.bf16.vlgmr.msra.gmra.mrb[8].mxu0 %vm1557_vm3, %v1498_v0 }
 0x493   : > { %2969 = vmatprep.mubr.msk.bf16.mxu0 %vm1557_vm3, %v1499_v2  ;;  %2907 = vmatpush3.bf16.msra.mxu0 %v3319_v63 }
 0x494   : > { %2908 = vmatprep.subr.bf16.mxu0 %v3320_v1 }
 0x497   : > { %2909 = vmatpush3.bf16.msra.mxu0 %v3321_v4 }
 0x498   : > { %2910 = vmatprep.subr.bf16.mxu0 %v3322_v7 }
 0x49a   : > { %2970 = vmatmul.mubr.msk.bf16.gmra.mrb[12].mxu0 %vm1557_vm3, %v1500_v9 }
 0x49b   : > { %2911 = vmatpush3.bf16.msra.mxu0 %v3323_v8  ;;  %2277 = vmatprep.mubr.bf16.mxu0 %v1940_v20 }
 0x49c   : > { %2912 = vmatprep.subr.bf16.mxu0 %v3324_v10 }
 0x49f   : > { %2913 = vmatpush3.bf16.msra.mxu0 %v3325_v13 }
 0x4a0   : > { %2914 = vmatprep.subr.bf16.mxu0 %v3326_v14 }
 0x4a3   : > { %2915 = vmatpush3.bf16.msra.mxu0 %v3327_v18 }
 0x4a4   : > { %2916 = vmatprep.subr.bf16.mxu0 %v3328_v19 }
 0x4a7   : > { %2917 = vmatpush3.bf16.msra.mxu0 %v3329_v24 }
 0x4a8   : > { %2918 = vmatprep.subr.bf16.mxu0 %v3330_v36 }
 0x4ab   : > { %2919 = vmatpush3.bf16.msra.mxu0 %v3331_v25 }
 0x4ac   : > { %2920 = vmatprep.subr.bf16.mxu0 %v3332_v39 }
 0x4af   : > { %2921 = vmatpush3.bf16.msra.mxu0 %v3333_v21 }
 0x4b2   : > { %2278 = vmatmul.mubr.bf16.vlgmr.msra.gmra.mrb[16].mxu0 %v1939_v30 }
 0x565   : > { %v2967_v20 = vpop.f32.mrb[8].mxu0 }
 0x566   : > { %v1616_v27 = vpop.f32.mrb[9].mxu0  ;;  %v1625_v35 = vadd.f32 %v2967_v20, %v1551_v17 }
 0x567   : > { %v1617_v53 = vadd.f32 %v1616_v27, %v1549_v22  ;;  %v2968_v61 = vpop.f32.mrb[10].mxu0 }
 0x568   : > { %v1619_v26 = vpop.f32.mrb[11].mxu0  ;;  %v1628_v28 = vadd.f32 %v2968_v61, %v1552_v38  ;;  %v1654_v30 = vsel %vm1647_vm4, %v1625_v35, -inf }
 0x569   : > { %v1620_v34 = vadd.f32 %v1619_v26, %v1550_v33  ;;  %v1648_v37 = vsel %vm1647_vm4, %v1617_v53, -inf }
 0x56a   : > { %1649 = vmax.xlane.f32.xlu0 %v1648_v37  ;;  %v1657_v23 = vsel %vm1647_vm4, %v1628_v28, -inf }
 0x56b   : > { %v1651_v40 = vsel %vm1647_vm4, %v1620_v34, -inf }
 0x56c   : > { %1652 = vmax.xlane.f32.xlu1 %v1651_v40 }
 0x56d   : > { %v2971_v29 = vpop.f32.mrb[12].mxu0 }
 0x56e   : > { %v1632_v41 = vpop.f32.mrb[13].mxu0  ;;  %1655 = vmax.xlane.f32.xlu0 %v1654_v30  ;;  %v1641_v55 = vadd.f32 %v2971_v29, %v1555_v50 }
 0x56f   : > { %v2972_v44 = vpop.f32.mrb[14].mxu0  ;;  %v1633_v48 = vadd.f32 %v1632_v41, %v1553_v42 }
 0x570   : > { %v1635_v47 = vpop.f32.mrb[15].mxu0  ;;  %v4640_v52 = vadd.f32 %v2972_v44, %v1556_v45  ;;  %v1666_v58 = vsel %vm1647_vm4, %v1641_v55, -inf }
 0x571   : > { %v4637_v49 = vadd.f32 %v1635_v47, %v1554_v43  ;;  %v1660_v56 = vsel %vm1647_vm4, %v1633_v48, -inf }
 0x572   : > { %1658 = vmax.xlane.f32.xlu0 %v1657_v23  ;;  %v1669_v57 = vsel %vm1647_vm4, %v4640_v52, -inf }
 0x573   : > { %v1663_v54 = vsel %vm1647_vm4, %v4637_v49, -inf }
 0x574   : > { %1664 = vmax.xlane.f32.xlu1 %v1663_v54 }
 0x576   : > { %1661 = vmax.xlane.f32.xlu0 %v1660_v56 }
 0x578   : > { %1670 = vmax.xlane.f32.xlu1 %v1669_v57 }
 0x57a   : > { %1667 = vmax.xlane.f32.xlu0 %v1666_v58 }
 0x585   : > { %v2922_v59 = vpop.f32.mrb[16].mxu0 }
 0x586   : > { %v2923_v60 = vpop.f32.mrb[17].mxu0 }
 0x587   : > { %v4648_v62 = vadd.f32 %v2923_v60, %v2922_v59  ;;  %v2925_v63 = vpop.f32.mrb[18].mxu0 }
 0x588   : > { %v2926_v0 = vpop.f32.mrb[19].mxu0 }
 0x589   : > { %v4650_v1 = vadd.f32 %v2926_v0, %v2925_v63 }
 0x5f7   : > { %v1650_v2 = vpop.xlane.xlu0 %1649 }
 0x5f8   : > { %v1672_v3 = vsub.f32 %v1617_v53, %v1650_v2 }
 0x5f9   : > { %v1653_v4 = vpop.xlane.xlu1 %1652 }
 0x5fa   : > { %v1680_v7 = vmul.f32 1.442695, %v1672_v3  ;;  %v1673_v8 = vsub.f32 %v1620_v34, %v1653_v4 }
 0x5fb   : > { %v1656_v5 = vpop.xlane.xlu0 %1655 }
 0x5fc   : > { %v1674_v6 = vsub.f32 %v1625_v35, %v1656_v5  ;;  %v1682_v14 = vmul.f32 1.442695, %v1673_v8 }
 0x5fe   : > { %v1684_v9 = vmul.f32 1.442695, %v1674_v6 }
 0x5ff   : > { %v1659_v10 = vpop.xlane.xlu0 %1658 }
 0x600   : > { %3378 = vpow2.f32 %v1684_v9  ;;  %v1675_v13 = vsub.f32 %v1628_v28, %v1659_v10 }
 0x601   : > { %3380 = vpow2.f32 %v1680_v7  ;;  %v1665_v40 = vpop.xlane.xlu1 %1664 }
 0x602   : > { %v1686_v18 = vmul.f32 1.442695, %v1675_v13  ;;  %v1677_v30 = vsub.f32 %v4637_v49, %v1665_v40  ;;  %v3339_v40 = vld [vmem:[%s4388_s16 + $0x10] sm:$0xff]  }
 0x603   : > { %v1662_v19 = vpop.xlane.xlu0 %1661 }
 0x604   : > { %3382 = vpow2.f32 %v1686_v18  ;;  %v1676_v24 = vsub.f32 %v1633_v48, %v1662_v19  ;;  %v1690_v42 = vmul.f32 1.442695, %v1677_v30  ;;  %v3341_v30 = vld [vmem:[%s4388_s16 + $0x18] sm:$0xff]  }
 0x605   : > { %3384 = vpow2.f32 %v1682_v14  ;;  %v1671_v28 = vpop.xlane.xlu1 %1670 }
 0x606   : > { %v1688_v21 = vmul.f32 1.442695, %v1676_v24  ;;  %v1679_v29 = vsub.f32 %v4640_v52, %v1671_v28  ;;  %v3334_v24 = vld [vmem:[%s4388_s16 + $0x40] sm:$0xff]  }
 0x607   : > { %v1668_v36 = vpop.xlane.xlu0 %1667 }
 0x608   : > { %v1678_v25 = vsub.f32 %v1641_v55, %v1668_v36  ;;  %v1694_v41 = vmul.f32 1.442695, %v1679_v29  ;;  %v3340_v29 = vld [vmem:[%s4388_s16 + $0x58] sm:$0xff]  }
 0x60a   : > { %v4652_v39 = vpop.eup %3378  ;;  %v1692_v22 = vmul.f32 1.442695, %v1678_v25 }
 0x60b   : > { %v1702_v20 = vsel %vm1647_vm4, %v4652_v39, 0.0  ;;  %v3381_v17 = vpop.eup %3380 }
 0x60c   : > { %3386 = vpow2.f32 %v1692_v22  ;;  %1703 = vadd.xlane.f32.xlu0 %v1702_v20  ;;  %v1696_v33 = vsel %vm1647_vm4, %v3381_v17, 0.0 }
 0x60d   : > { %3388 = vpow2.f32 %v1688_v21  ;;  %v3335_v21 = vld [vmem:[%s4388_s16] sm:$0xff]  }
 0x60e   : > { %v4656_v27 = vpop.eup %3382  ;;  %3390 = vpow2.f32 %v1694_v41  ;;  %v3343_v41 = vld [vmem:[%s4388_s16 + $0x20] sm:$0xff]  }
 0x60f   : > { %v1705_v53 = vsel %vm1647_vm4, %v4656_v27, 0.0  ;;  %v3385_v61 = vpop.eup %3384  ;;  %3392 = vpow2.f32 %v1690_v42  ;;  %v3344_v42 = vld [vmem:[%s4388_s16 + $0x68] sm:$0xff]  }
 0x610   : > { %1697 = vadd.xlane.f32.xlu0 %v1696_v33  ;;  %1706 = vadd.xlane.f32.xlu1 %v1705_v53  ;;  %v1699_v26 = vsel %vm1647_vm4, %v3385_v61, 0.0 }
 0x614   : > { %1700 = vadd.xlane.f32.xlu1 %v1699_v26  ;;  %v3337_v26 = vld [vmem:[%s4388_s16 + $0x8] sm:$0xff]  }
 0x616   : > { %v4662_v35 = vpop.eup %3386 }
 0x617   : > { %v1714_v34 = vsel %vm1647_vm4, %v4662_v35, 0.0  ;;  %v4666_v37 = vpop.eup %3388 }
 0x618   : > { %1715 = vadd.xlane.f32.xlu0 %v1714_v34  ;;  %v1708_v38 = vsel %vm1647_vm4, %v4666_v37, 0.0  ;;  %v4676_v43 = vpop.eup %3390 }
 0x619   : > { %v1717_v44 = vsel %vm1647_vm4, %v4676_v43, 0.0  ;;  %v3393_v45 = vpop.eup %3392 }
 0x61a   : > { %v1711_v47 = vsel %vm1647_vm4, %v3393_v45, 0.0 }
 0x61c   : > { %1709 = vadd.xlane.f32.xlu0 %v1708_v38  ;;  %v3338_v38 = vld [vmem:[%s4388_s16 + $0x50] sm:$0xff]  }
 0x625   : > { %3214 = vrot.lane.b32.xlu1 %v4523_v51, %s3819_s5 }
 0x632   : > { %3209 = vrot.lane.b32.xlu0 %v4523_v51, %s3820_s29 }
 0x649   : > { %1718 = vadd.xlane.f32.xlu1 %v1717_v44  ;;  %v3346_v44 = vld [vmem:[%s4388_s16 + $0x70] sm:$0xff]  }
 0x64d   : > { %1712 = vadd.xlane.f32.xlu1 %v1711_v47  ;;  %v3351_v47 = vld [vmem:[%s4386_s12 + $0x8] sm:$0xff]  }
 0x65e   : > { %3219 = vrot.lane.b32.xlu1 %v4523_v51, %s3821_s28 }
 0x699   : > { %v1704_v48 = vpop.xlane.xlu0 %1703 }
 0x69d   : > { %v1707_v23 = vpop.xlane.xlu1 %1706  ;;  %v1698_v49 = vpop.xlane.xlu0 %1697 }
 0x69e   : > { %3394 = vrcp.f32 %v1698_v49  ;;  %v3356_v49 = vld [vmem:[%s4386_s12 + $0x30] sm:$0xff]  }
 0x6a1   : > { %v1701_v50 = vpop.xlane.xlu1 %1700 }
 0x6a2   : > { %3396 = vrcp.f32 %v1701_v50 }
 0x6a3   : > { %3398 = vrcp.f32 %v1707_v23  ;;  %v3353_v23 = vld [vmem:[%s4386_s12 + $0x18] sm:$0xff]  }
 0x6a4   : > { %3400 = vrcp.f32 %v1704_v48  ;;  %v3352_v48 = vld [vmem:[%s4386_s12 + $0x10] sm:$0xff]  }
 0x6a5   : > { %v1716_v52 = vpop.xlane.xlu0 %1715  ;;  %v3215_v56 = vpop.permute.xlu1 %3214 }
 0x6a6   : > { %v3217_v63 = vunpack.i.h.bf16 %v3215_v56  ;;  %v3216_v0 = vunpack.i.l.bf16 %v3215_v56  ;;  %v3357_v56 = vld [vmem:[%s4386_s12 + $0x38] sm:$0xff]  }
 0x6a8   : > { %v3395_v55 = vpop.eup %3394  ;;  %v1547_v5 = vpack.c.bf16 %v3217_v63, %v3216_v0 }
 0x6a9   : > { %v1710_v54 = vpop.xlane.xlu0 %1709  ;;  %v1728_v59 = vmul.f32 %v3395_v55, %v3381_v17  ;;  %v3336_v17 = vld [vmem:[%s4388_s16 + $0x48] sm:$0xff]  }
 0x6aa   : > { %3402 = vrcp.f32 %v1710_v54 }
 0x6ac   : > { %v3397_v57 = vpop.eup %3396 }
 0x6ad   : > { %v3210_v58 = vpop.permute.xlu0 %3209  ;;  %v1729_v60 = vmul.f32 %v3397_v57, %v3385_v61  ;;  %v3399_v8 = vpop.eup %3398 }
 0x6ae   : > { %v3212_v2 = vunpack.i.h.bf16 %v3210_v58  ;;  %v3211_v3 = vunpack.i.l.bf16 %v3210_v58  ;;  %v3401_v14 = vpop.eup %3400  ;;  %v1731_v18 = vmul.f32 %v3399_v8, %v4656_v27 }
 0x6af   : > { %v1736_v4 = vpack.c.bf16 %v1729_v60, %v1728_v59  ;;  %v1730_v25 = vmul.f32 %v3401_v14, %v4652_v39 }
 0x6b0   : > { %v1546_v51 = vpack.c.bf16 %v3212_v2, %v3211_v3  ;;  %v2803_v3 = vld [vmem:[%s804_s13] ss:$0 sm:$0xff] }
 0x6b1   : > { %2981 = vmatprep.mubr.msk.bf16.mxu1 %vm1647_vm4, %v1736_v4  ;;  %v1737_v20 = vpack.c.bf16 %v1731_v18, %v1730_v25 }
 0x6b2   : > { %2975 = vmatprep.subr.bf16.mxu1 %v1546_v51 }
 0x6b3   : > { %2976 = vmatpush3.bf16.msra.mxu1 %v1546_v51 }
 0x6b4   : > { %2977 = vmatprep.subr.bf16.mxu1 %v1547_v5  ;;  %v3403_v36 = vpop.eup %3402 }
 0x6b5   : > { %v1732_v53 = vmul.f32 %v3403_v36, %v4666_v37 }
 0x6b7   : > { %2978 = vmatpush3.bf16.msra.mxu1 %v1547_v5 }
 0x6d6   : > { %v1719_v6 = vpop.xlane.xlu1 %1718 }
 0x6da   : > { %v1713_v7 = vpop.xlane.xlu1 %1712 }
 0x6db   : > { %3404 = vrcp.f32 %v1713_v7 }
 0x6dc   : > { %3406 = vrcp.f32 %v1719_v6 }
 0x6dd   : > { %3408 = vrcp.f32 %v1716_v52 }
 0x6de   : > { %v3220_v9 = vpop.permute.xlu1 %3219 }
 0x6df   : > { %v3222_v10 = vunpack.i.h.bf16 %v3220_v9  ;;  %v3221_v13 = vunpack.i.l.bf16 %v3220_v9 }
 0x6e1   : > { %v1548_v19 = vpack.c.bf16 %v3222_v10, %v3221_v13 }
 0x6e3   : > { %2979 = vmatprep.subr.bf16.mxu1 %v1548_v19 }
 0x6e4   : > { %2980 = vmatpush3.bf16.msra.mxu1 %v1548_v19 }
 0x6e5   : > { %v3405_v22 = vpop.eup %3404  ;;  %2884 = vmatprep.subr.bf16.mxu1 %v3334_v24 }
 0x6e6   : > { %v3407_v33 = vpop.eup %3406  ;;  %v1733_v27 = vmul.f32 %v3405_v22, %v3393_v45  ;;  %v3347_v45 = vld [vmem:[%s4388_s16 + $0x30] sm:$0xff]  }
 0x6e7   : > { %2982 = vmatmul.mubr.msk.bf16.vlgmr.msra.gmra.mrb[8].mxu1 %vm1647_vm4, %v1737_v20  ;;  %v3409_v61 = vpop.eup %3408  ;;  %v1735_v34 = vmul.f32 %v3407_v33, %v4676_v43  ;;  %v3345_v43 = vld [vmem:[%s4388_s16 + $0x28] sm:$0xff]  }
 0x6e8   : > { %2885 = vmatpush3.bf16.msra.mxu1 %v3335_v21  ;;  %v1738_v39 = vpack.c.bf16 %v1733_v27, %v1732_v53  ;;  %v1734_v37 = vmul.f32 %v3409_v61, %v4662_v35  ;;  %v3342_v35 = vld [vmem:[%s4388_s16 + $0x60] sm:$0xff]  }
 0x6e9   : > { %2886 = vmatprep.subr.bf16.mxu1 %v3336_v17 }
 0x6ea   : > { %2985 = vmatprep.mubr.msk.bf16.mxu1 %vm1647_vm4, %v1738_v39  ;;  %v1739_v28 = vpack.c.bf16 %v1735_v34, %v1734_v37 }
 0x6ec   : > { %2887 = vmatpush3.bf16.msra.mxu1 %v3337_v26 }
 0x6ed   : > { %2888 = vmatprep.subr.bf16.mxu1 %v3338_v38  ;;  %v3410_v38 = vld [vmem:[#allocation2] sm:$0xff] }
 0x6ef   : > { %2986 = vmatmul.mubr.msk.bf16.gmra.mrb[12].mxu1 %vm1647_vm4, %v1739_v28 }
 0x6f0   : > { %2889 = vmatpush3.bf16.msra.mxu1 %v3339_v40  ;;  %2236 = vmatprep.mubr.bf16.mxu1 %v1938_v16  ;;  %v3350_v16 = vld [vmem:[%s4386_s12] sm:$0xff]   ;;  %s4968_s12 = sld [smem:[#allocation30_spill]] }
 0x6f1   : > { %2890 = vmatprep.subr.bf16.mxu1 %v3340_v29  ;;  %v3411_v29 = vld [vmem:[#allocation2 + $0x8] sm:$0xff] }
 0x6f4   : > { %2891 = vmatpush3.bf16.msra.mxu1 %v3341_v30 }
 0x6f5   : > { %2892 = vmatprep.subr.bf16.mxu1 %v3342_v35 }
 0x6f6   : > { %p2844_p0 = scmp.ne.s32.totalorder %s4968_s12, 1 }
 0x6f7   : > { %s4969_s27 = sld [smem:[#allocation54_spill]] (!%p2844_p0)  ;;  %s4970_s6 = sld [smem:[#allocation55_spill]] (!%p2844_p0) }
 0x6f8   : > { %2893 = vmatpush3.bf16.msra.mxu1 %v3343_v41 }
 0x6f9   : > { %2894 = vmatprep.subr.bf16.mxu1 %v3344_v42 }
 0x6fc   : > { %2895 = vmatpush3.bf16.msra.mxu1 %v3345_v43 }
 0x6fd   : > { %2896 = vmatprep.subr.bf16.mxu1 %v3346_v44 }
 0x700   : > { %2897 = vmatpush3.bf16.msra.mxu1 %v3347_v45 }
 0x701   : > { %2898 = vmatprep.subr.bf16.mxu1 %v3348_v31 }
 0x704   : > { %2899 = vmatpush3.bf16.msra.mxu1 %v3349_v32 }
 0x705   : > { %2989 = vmatprep.subr.bf16.mxu1 %v3815_v46 }
 0x707   : > { %2237 = vmatmul.mubr.bf16.vlgmr.msra.gmra.mrb[16].mxu1 %v1937_v15 }
 0x708   : > { %3005 = vmatprep.mubr.msk.bf16.mxu1 %vm3816_vm0, %v3815_v46  ;;  %2990 = vmatpush3.bf16.msra.mxu1 %v3350_v16 }
 0x709   : > { %2991 = vmatprep.subr.bf16.mxu1 %v3815_v46 }
 0x70c   : > { %2992 = vmatpush3.bf16.msra.mxu1 %v3351_v47 }
 0x70d   : > { %2993 = vmatprep.subr.bf16.mxu1 %v3815_v46 }
 0x710   : > { %2994 = vmatpush3.bf16.msra.mxu1 %v3352_v48 }
 0x711   : > { %2995 = vmatprep.subr.bf16.mxu1 %v3815_v46 }
 0x714   : > { %2996 = vmatpush3.bf16.msra.mxu1 %v3353_v23 }
 0x715   : > { %2997 = vmatprep.subr.bf16.mxu1 %v3815_v46 }
 0x718   : > { %2998 = vmatpush3.bf16.msra.mxu1 %v3354_v11 }
 0x719   : > { %2999 = vmatprep.subr.bf16.mxu1 %v3815_v46 }
 0x71c   : > { %3000 = vmatpush3.bf16.msra.mxu1 %v3355_v12 }
 0x71d   : > { %3001 = vmatprep.subr.bf16.mxu1 %v3815_v46 }
 0x720   : > { %3002 = vmatpush3.bf16.msra.mxu1 %v3356_v49  ;;  %v2845_v49 = vld [vmem:[%s4969_s27] ss:$0 sm:$0xff] (!%p2844_p0) }
 0x721   : > { %3003 = vmatprep.subr.bf16.mxu1 %v3815_v46 }
 0x724   : > { %3004 = vmatpush3.bf16.msra.mxu1 %v3357_v56 }
 0x7ba   : > { %v2983_v15 = vpop.f32.mrb[8].mxu1 }
 0x7bb   : > { %v1786_v50 = vpop.f32.mrb[9].mxu1 }
 0x7bc   : > { %v2984_v52 = vpop.f32.mrb[10].mxu1 }
 0x7bd   : > { %v3223_v54 = vpack.i.bf16 %v2984_v52, %v2983_v15  ;;  %v1789_v55 = vpop.f32.mrb[11].mxu1  ;;  %v2846_v52 = vld [vmem:[%s4970_s6] ss:$0 sm:$0xff] (!%p2844_p0) }
 0x7bf   : > { %3224 = vrot.lane.b32.xlu1 %v3223_v54, %s3821_s28 }
 0x7c2   : > { %v2987_v57 = vpop.f32.mrb[12].mxu1 }
 0x7c3   : > { %v1802_v58 = vpop.f32.mrb[13].mxu1 }
 0x7c4   : > { %v2988_v59 = vpop.f32.mrb[14].mxu1 }
 0x7c5   : > { %v3233_v60 = vpack.i.bf16 %v2988_v59, %v2987_v57  ;;  %v1805_v63 = vpop.f32.mrb[15].mxu1 }
 0x7c6   : > { %v3228_v0 = vpack.i.bf16 %v1805_v63, %v1802_v58 }
 0x7c7   : > { %3234 = vrot.lane.b32.xlu1 %v3233_v60, %s3820_s29 }
 0x7c8   : > { %3229 = vrot.lane.b32.xlu0 %v3228_v0, %s3819_s5 }
 0x7da   : > { %v2900_v2 = vpop.f32.mrb[16].mxu1 }
 0x7db   : > { %v2901_v4 = vpop.f32.mrb[17].mxu1 }
 0x7dc   : > { %v2902_v51 = vadd.f32 %v2901_v4, %v2900_v2  ;;  %v2903_v46 = vpop.f32.mrb[18].mxu1 }
 0x7dd   : > { %v2904_v5 = vpop.f32.mrb[19].mxu1 }
 0x7de   : > { %v2239_v6 = vadd.f32 %v2902_v51, %v2803_v3  ;;  %v2905_v7 = vadd.f32 %v2904_v5, %v2903_v46 }
 0x7e0   : > { %v2242_v8 = vadd.f32 %v2905_v7, %v2803_v3  ;;  %v2280_v9 = vadd.f32 %v4648_v62, %v2239_v6 }
 0x7e2   : > { %v2283_v10 = vadd.f32 %v4650_v1, %v2242_v8 }
 0x831   : > { %v3225_v13 = vpop.permute.xlu1 %3224 }
 0x832   : > { %v3227_v14 = vunpack.i.h.bf16 %v3225_v13  ;;  %v3226_v18 = vunpack.i.l.bf16 %v3225_v13 }
 0x834   : > { %v1841_v21 = vsel %vm1557_vm3, %v1786_v50, %v3226_v18  ;;  %v1842_v22 = vsel %vm1557_vm3, %v1789_v55, %v3227_v14 }
 0x839   : > { %v3235_v19 = vpop.permute.xlu1 %3234 }
 0x83a   : > { %v3230_v24 = vpop.permute.xlu0 %3229  ;;  %v3237_v20 = vunpack.i.h.bf16 %v3235_v19  ;;  %v3236_v17 = vunpack.i.l.bf16 %v3235_v19 }
 0x83b   : > { %v3232_v36 = vunpack.i.h.bf16 %v3230_v24  ;;  %v3231_v25 = vunpack.i.l.bf16 %v3230_v24 }
 0x83d   : > { %v1844_v33 = vsel %vm1647_vm4, %v1842_v22, %v3232_v36  ;;  %v1843_v62 = vsel %vm1647_vm4, %v1841_v21, %v3231_v25 }
 0x83e   : > { %v1847_v53 = vsel %vm1845_vm5, %v1844_v33, %v3237_v20  ;;  %v1846_v1 = vsel %vm1845_vm5, %v1843_v62, %v3236_v17 }
 0x83f   : > { %v1848_v27 = vpack.c.bf16 %v1847_v53, %v1846_v1 }
 0x841   : > { %3006 = vmatmul.mubr.bf16.vlgmr.msra.gmra.mrb[20].mxu1 %v1848_v27 }
 0x914   : > { %v2368_v61 = vpop.f32.mrb[20].mxu1 }
 0x915   : > { %v2369_v39 = vadd.f32 %v2368_v61, %v2280_v9  ;;  %v3007_v26 = vpop.f32.mrb[21].mxu1  ;;  %2382 = sbr.rel (%p2844_p0) target bundleno = 2645 (0xa55), region = 116 }
 0x916   : > { %v2371_v34 = vpop.f32.mrb[22].mxu1 }
 0x917   : > { %v2375_v37 = vadd.f32 %v3410_v38, %v2369_v39  ;;  %v2372_v40 = vadd.f32 %v2371_v34, %v2283_v10  ;;  %v3008_v28 = vpop.f32.mrb[23].mxu1 }
 0x919   : > { %2377 = vst [vmem:[#allocation2] sm:$0xff] %v2375_v37  ;;  %v2376_v30 = vadd.f32 %v3411_v29, %v2372_v40  ;;  %2383 = vadd.xlane.f32.xlu0 (!%p2844_p0), %v2375_v37 }
 0x91b   : > { %2378 = vst [vmem:[#allocation2 + $0x8] sm:$0xff] %v2376_v30 }
 0x91d   : > { %2385 = vadd.xlane.f32.xlu0 %v2376_v30 }
 0x9a6   : > { %v2384_v35 = vpop.xlane.xlu0 %2383 }
 0x9a7   : > { %v2387_v41 = vmul.f32 0.0078125, %v2384_v35 }
 0x9a9   : > { %v2389_v42 = vsub.f32 %v2375_v37, %v2387_v41 }
 0x9aa   : > { %v2386_v43 = vpop.xlane.xlu0 %2385 }
 0x9ab   : > { %v2388_v44 = vmul.f32 0.0078125, %v2386_v43  ;;  %v2391_v45 = vmul.f32 %v2389_v42, %v2389_v42 }
 0x9ad   : > { %v2390_v31 = vsub.f32 %v2376_v30, %v2388_v44  ;;  %2393 = vadd.xlane.f32.xlu1 %v2391_v45 }
 0x9af   : > { %v2392_v32 = vmul.f32 %v2390_v31, %v2390_v31 }
 0x9b1   : > { %2395 = vadd.xlane.f32.xlu1 %v2392_v32 }
 0xa3a   : > { %v2394_v16 = vpop.xlane.xlu1 %2393 }
 0xa3b   : > { %v2397_v47 = vmul.f32 0.0078125, %v2394_v16 }
 0xa3d   : > { %v2399_v48 = vadd.f32 1e-05, %v2397_v47 }
 0xa3e   : > { %v2396_v23 = vpop.xlane.xlu1 %2395 }
 0xa3f   : > { %3412 = vrsqrt.f32 %v2399_v48  ;;  %v2398_v11 = vmul.f32 0.0078125, %v2396_v23 }
 0xa41   : > { %v2400_v12 = vadd.f32 1e-05, %v2398_v11 }
 0xa43   : > { %3414 = vrsqrt.f32 %v2400_v12 }
 0xa49   : > { %v3413_v15 = vpop.eup %3412 }
 0xa4a   : > { %v2403_v50 = vmul.f32 %v3413_v15, %v2389_v42 }
 0xa4c   : > { %v2412_v54 = vmul.f32 %v2845_v49, %v2403_v50 }
 0xa4d   : > { %v3415_v55 = vpop.eup %3414 }
 0xa4e   : > { %v2421_v56 = vadd.f32 %v2846_v52, %v2412_v54  ;;  %v2404_v57 = vmul.f32 %v3415_v55, %v2390_v31 }
 0xa50   : > { %2423 = vst [vmem:[%s4418_s24] sm:$0xff] %v2421_v56  ;;  %v2413_v58 = vmul.f32 %v2845_v49, %v2404_v57 }
 0xa52   : > { %v2422_v59 = vadd.f32 %v2846_v52, %v2413_v58 }
 0xa54   : > { %2424 = vst [vmem:[%s4418_s24 + $0x8] sm:$0xff] %v2422_v59 }
 0xa55 PF: > { %s4971_s26 = sld [smem:[#allocation31_spill]]  ;;  %s4972_s15 = sld [smem:[#allocation38_spill]] }
 0xa56   : > { %s4973_s0 = sld [smem:[#allocation56_spill]]  ;;  %s2439_s9 = sshll.u32 %s4418_s24, 4  ;;  %s4762_s9 = int_to_ptr.vmem [resolvable:$true] %s2439_s9 }
 0xa57   : > { %s2426_s7 = scalar_lea.sflag [#allocation5], %s4347_s19  ;;  %s3654_s1 = scalar_lea.vmem %s4762_s9, 256 }
 0xa58   : > { %p3655_p3 = scmp.ne.s32.totalorder %s4762_s9, %s3654_s1  ;;  %s3822_s8 = smov [#allocation17]  }
 0xa59   : > { %s3658_s3 = sshll.u32 %s3822_s8, 4  ;;  %s3659_s3 = int_to_ptr.vmem [resolvable:$false] %s3658_s3 }
 0xa5a   : > { %s3660_s30 = scalar_lea.vmem %s3659_s3, 512  ;;  %p3661_p2 = scmp.lt.s32.totalorder %s4762_s9, %s3659_s3 }
 0xa5b   : > { %s2858_s18 = sshll.u32 %s4971_s26, 8  ;;  %p4974_p11 = scmp.ne.s32.totalorder %s4972_s15, 0 }
 0xa5c   : > { %s4759_s2 = scalar_lea.hbm %s4973_s0, %s2858_s18  ;;  %p3662_p9 = scmp.lt.s32.totalorder %s3660_s30, %s3654_s1 }
 0xa5d   : > { %p3656_p1 = pnand %p3655_p3, %p4974_p11 }
 0xa5e   : > { %p3663_p4 = por %p3662_p9, %p3661_p2 }
 0xa5f   : > { %p3657_p13 = pneg %p3656_p1 }
 0xa61   : > { %p3664_p6 = pnand %p3663_p4, %p3657_p13 }
 0xa63   : > { %3667 = shalt.err (!%p3664_p6)
}
 0xa64   : > { %s3668_s24 = scalar_lea.hbm %s4759_s2, 256  ;;  %s3672_s28 = scalar_lea.hbm %s4973_s0, 512 }
 0xa65   : > { %p3669_p5 = scmp.ne.s32.totalorder %s4759_s2, %s3668_s24  ;;  %p3673_p8 = scmp.lt.u32.totalorder %s4759_s2, %s4973_s0 }
 0xa66   : > { %p3674_p12 = scmp.lt.u32.totalorder %s3672_s28, %s3668_s24  ;;  %p3676_p3 = scmp.lt.u32.totalorder %s3668_s24, %s4759_s2 }
 0xa67   : > { %p3670_p7 = pnand %p3669_p5, %p4974_p11 }
 0xa68   : > { %p3675_p0 = por %p3674_p12, %p3673_p8 }
 0xa69   : > { %p3671_p10 = pneg %p3670_p7 }
 0xa6a   : > { %p3677_p1 = por %p3676_p3, %p3675_p0 }
 0xa6c   : > { %p3678_p13 = pnand %p3677_p1, %p3671_p10 }
 0xa6e   : > { %3681 = shalt.err (!%p3678_p13)
}
 0xa6f   : > { %s3823_s20 = smov 128   ;;  %s3824_s12 = smov 8  }
 0xa70   : > { %3035 = dma.vmem_to_hbm [thread:$0]  (%p4974_p11), %s4762_s9, 256, %s4759_s2, %s2426_s7, %s3823_s20, %s3823_s20, %s3824_s12  }
 0xa71 PF: > { %s4975_s11 = sld [smem:[#allocation32_spill]]  ;;  %s4976_s14 = sld [smem:[#allocation27_spill]] }
 0xa72   : > { %s4977_s27 = sld [smem:[#allocation36_spill]] }
 0xa77   : > { %p3070_p2 = scmp.ge.s32.totalorder %s4975_s11, 2  ;;  %s2454_s25 = sand.u32 1, %s4976_s14  }
 0xa78   : > { %p4978_p9 = scmp.ne.s32.totalorder %s4977_s27, 0  ;;  %s2455_s23 = scalar_lea.sflag [#allocation5], %s2454_s25 }
 0xa7a   : > { %p3064_p4 = pnand %p3070_p2, %p4978_p9 }
 0xa7c   : > { %3751 = dma.done.wait (!%p3064_p4), %s2455_s23, 256  }
 0xa7d   : > { %3753 = vsyncadd (!%p3064_p4), %s2455_s23, 4294967040  ;;  %s42_s23 = sadd.s32 1, %s4975_s11   ;;  %s4979_s29 = sld [smem:[#allocation25_spill]] }
 0xa7e   : > { %p39_p6 = scmp.ge.s32.totalorder %s42_s23, 6   ;;  %s4980_s30 = sld [smem:[#allocation26_spill]] }
 0xa7f   : > { %s4981_s15 = sld [smem:[#allocation41_spill]]  ;;  %s4982_s16 = sld [smem:[#allocation28_spill]] }
 0xa80   : > { %s4983_s17 = sld [smem:[#allocation29_spill]]  ;;  %s4984_s18 = sld [smem:[#allocation42_spill]] }
 0xa81   : > { %s4985_s6 = sld [smem:[#allocation39_spill]]  ;;  %s4986_s26 = sld [smem:[#allocation40_spill]] }
 0xa82   : > { %s4987_s19 = smov %s3788_s21  ;;  %s4988_s20 = smov %s3792_s22 }
 0xa83   :  { %41 = sbr.rel (!%p39_p6) target bundleno = 32 (0x20), region = 219 }
 0xa87   : > { %s4989_s21 = smov %s4985_s6  ;;  %s4990_s22 = smov %s4986_s26 }
 0xa8a   :  { %2460 = vsyncpa [#allocation4], 1 }
 0xa8b   :  { %2462 = vsyncpa [#allocation4 + $0x1], 1 }
 0xa8c   :  { %2463 = vsyncpa [#allocation7], 1 }
 0xa8d   :  { %2465 = vsyncpa [#allocation7 + $0x1], 1 }
 0xa8e   :  { %2466 = vsyncpa [#allocation10], 1 }
 0xa8f   :  { %2468 = vsyncpa [#allocation10 + $0x1], 1 }
 0xa90   :  { %2469 = vsyncpa [#allocation13], 1 }
 0xa91   :  { %2471 = vsyncpa [#allocation13 + $0x1], 1 }
 0xa92   :  { %2472 = vsyncpa [#allocation16], 1 }
 0xa93   :  { %2474 = vsyncpa [#allocation16 + $0x1], 1 }
 0xa94   :  { %2475 = vsyncpa [#allocation5], 1 }
 0xa95   :  { %2477 = vsyncpa [#allocation5 + $0x1], 1 }

</bundles_post_ra>
